<compile_context>
chip_gen: v7x
topology: tpu7x:2x2x1
jax: 0.10.0
libtpu: 0.0.40
codegen_flags: <defaults>
</compile_context>

<pallas_src>
import jax
import jax.numpy as jnp
from jax.experimental import pallas as pl
from jax.experimental.pallas import tpu as pltpu


VOCAB = 256 + 5            # as in the PyTorch module
VOCAB_PAD = 384            # vocab rows padded to a multiple of 128 (clean MXU K-dim)
TILE_MAX = 2048            # max index rows per grid step


def _round_up(x, m):
    return (x + m - 1) // m * m


def _embed_kernel(idx_ref, table_ref, out_ref):
    # idx_ref:   (TN, 1)      int32     -- tile of edge-feature indices
    # table_ref: (V_pad, D)   f32/bf16  -- full table, resident in VMEM
    # out_ref:   (TN, D)      f32/bf16  -- gathered embeddings
    idx = idx_ref[...]                                     # (TN, 1)
    tn = idx.shape[0]
    vpad = table_ref.shape[0]
    # One-hot built once per tile; 0/1 values are exact in any float dtype.
    col = jax.lax.broadcasted_iota(jnp.int32, (tn, vpad), 1)
    one_hot = (col == idx).astype(table_ref.dtype)         # (TN, V_pad)
    out_ref[...] = jnp.dot(
        one_hot, table_ref[...], preferred_element_type=jnp.float32
    ).astype(out_ref.dtype)


def prepare_bond_embedding_table(embed_table, table_dtype=jnp.float32):
    """One-time table prep: pad vocab rows 261 -> 384 and cast.

    Call once at init and cache the result; do NOT rebuild it every forward.
    """
    v, d = embed_table.shape
    assert v == VOCAB, f"expected {VOCAB} vocab rows, got {v}"
    return (jnp.zeros((VOCAB_PAD, d), table_dtype)
            .at[:VOCAB, :].set(embed_table.astype(table_dtype)))


def _choose_tile_n(n):
    if n <= 512:
        # Tiny/medium input: one fat tile (no extra grid-step overhead).
        return _round_up(max(n, 8), 16)
    # Balanced tiles, at least 2 so both v7x TensorCores get equal work.
    n_tiles = max(2, pl.cdiv(n, TILE_MAX))
    return _round_up(pl.cdiv(n, n_tiles), 16)


def bond_embedding_forward(edge_features, table_pad, *, out_dtype=jnp.float32):
    """edge_features: (N,) int; table_pad: (VOCAB_PAD, D) prepared table
    (from prepare_bond_embedding_table) -> (N, D) array of out_dtype."""
    n = edge_features.shape[0]
    vpad, d = table_pad.shape

    # No host-side padding of the indices: just view as (N, 1); the ragged
    # tail grid block is handled by Pallas (tail rows never stored).
    idx2d = edge_features.astype(jnp.int32).reshape(n, 1)

    tile_n = _choose_tile_n(n)
    grid_n = pl.cdiv(n, tile_n)

    # VMEM budget for this tiling (VMEM lane padding of narrow dims included),
    # clamped to the 16/32 MiB scoped defaults so it is safe on all generations.
    tab_bytes = jnp.dtype(table_pad.dtype).itemsize
    out_bytes = jnp.dtype(out_dtype).itemsize
    lane_d = _round_up(max(d, 128), 128)
    vmem_bytes = (
        2 * tile_n * 128 * 4               # idx tiles (lane-padded), double-buffered
        + vpad * lane_d * tab_bytes        # resident table, single copy
        + 2 * tile_n * lane_d * out_bytes  # output tiles, double-buffered
        + tile_n * vpad * tab_bytes        # one-hot temporary / headroom
    )
    vmem_limit = int(min(max(2 * vmem_bytes, 16 << 20), 32 << 20))

    return pl.pallas_call(
        _embed_kernel,
        out_shape=jax.ShapeDtypeStruct((n, d), out_dtype),
        grid_spec=pltpu.PrefetchScalarGridSpec(
            num_scalar_prefetch=0,
            grid=(grid_n,),
            in_specs=[
                # Index tile, auto-pipelined over the grid (ragged tail OK).
                pl.BlockSpec((tile_n, 1), lambda i: (i, 0)),
                # Full embedding table: one resident VMEM copy, no per-step DMA.
                pl.BlockSpec(memory_space=pltpu.MemorySpace.VMEM),
            ],
            # Un-padded output width: minimal HBM store bytes (masked vst is
            # fine here); no post-kernel slice needed.
            out_specs=pl.BlockSpec((tile_n, d), lambda i: (i, 0)),
        ),
        compiler_params=pltpu.CompilerParams(
            dimension_semantics=("parallel",),
            vmem_limit_bytes=vmem_limit,
        ),
    )(idx2d, table_pad)


def init_bond_embedding_params(key, embed_dim):
    """Deterministic xavier_normal_ init of the (VOCAB, embed_dim) table."""
    fan_in, fan_out = VOCAB, embed_dim
    std = (2.0 / (fan_in + fan_out)) ** 0.5
    return jax.random.normal(key, (VOCAB, embed_dim), dtype=jnp.float32) * std


if __name__ == "__main__":
    key = jax.random.PRNGKey(0)
    k_tab, k_idx = jax.random.split(key)

    embed_dim = 32          # module's embed_dim (output stays exactly this width)
    n_edges = 1000          # ragged on purpose: exercises balanced tiles + ragged tail

    table = init_bond_embedding_params(k_tab, embed_dim)            # (261, 32) f32
    edge_features = jax.random.randint(k_idx, (n_edges,), 0, VOCAB, dtype=jnp.int32)

    # One-time table prep (hoisted out of the forward, cache in practice).
    table_f32 = prepare_bond_embedding_table(table)                       # exact path
    table_bf16 = prepare_bond_embedding_table(table, jnp.bfloat16)        # fast path

    # Default path: f32 table, f32 output -> parity with the f32 nn.Embedding.
    out = jax.block_until_ready(bond_embedding_forward(edge_features, table_f32))
    assert out.shape == (n_edges, embed_dim)
    assert out.dtype == jnp.float32
    ref_f32 = jnp.take(table, edge_features, axis=0)
    assert jnp.allclose(out, ref_f32, atol=1e-6), "mismatch vs f32 reference gather"

    # Optional reduced-traffic path: bf16 table + bf16 output (f32 accumulation).
    out_bf16 = jax.block_until_ready(
        bond_embedding_forward(edge_features, table_bf16, out_dtype=jnp.bfloat16))
    assert out_bf16.dtype == jnp.bfloat16
    ref_bf16 = jnp.take(table.astype(jnp.bfloat16), edge_features, axis=0)
    assert jnp.allclose(out_bf16.astype(jnp.float32),
                        ref_bf16.astype(jnp.float32), atol=1e-6), \
        "mismatch vs bf16 reference gather"

    print("KERNEL_OK")
</pallas_src>

<mosaic_0001>
module attributes {stable_mosaic.version = 11 : i64} {
  func.func @_embed_kernel(%arg0: i32, %arg1: memref<512x1xi32, #tpu.memory_space<vmem>>, %arg2: memref<384x32xf32, #tpu.memory_space<vmem>>, %arg3: memref<512x32xf32, #tpu.memory_space<vmem>>) attributes {dimension_semantics = [#tpu.dimension_semantics<parallel>], iteration_bounds = array<i64: 2>, scalar_prefetch = 0 : i64, scratch_operands = 0 : i64, tpu.core_type = #tpu.core_type<tc>, window_params = [{transform_indices = @transform_0, window_bounds = array<i64: 512, 1>}, {pipeline_mode = #tpu.pipeline_mode<synchronous>, transform_indices = @transform_1, window_bounds = array<i64: 384, 32>}, {transform_indices = @transform_2, window_bounds = array<i64: 512, 32>}]} {
    %c0 = arith.constant 0 : index
    %c0_0 = arith.constant 0 : index
    %0 = vector.load %arg1[%c0, %c0_0] : memref<512x1xi32, #tpu.memory_space<vmem>>, vector<512x1xi32>
    %1 = tpu.iota {dimensions = array<i32: 1>} : vector<512x384xi32>
    %2 = vector.broadcast %0 : vector<512x1xi32> to vector<512x384xi32>
    %3 = arith.cmpi eq, %1, %2 : vector<512x384xi32>
    %4 = arith.extui %3 : vector<512x384xi1> to vector<512x384xi32>
    %5 = arith.sitofp %4 : vector<512x384xi32> to vector<512x384xf32>
    %c0_1 = arith.constant 0 : index
    %c0_2 = arith.constant 0 : index
    %6 = vector.load %arg2[%c0_1, %c0_2] : memref<384x32xf32, #tpu.memory_space<vmem>>, vector<384x32xf32>
    %cst = arith.constant dense<0.000000e+00> : vector<512x32xf32>
    %7 = tpu.matmul %5, %6, %cst {dimension_numbers = #tpu.dot_dimension_numbers<[1], [0], [0], [1], [0, 0, 1, 1], [], []>} : vector<512x384xf32>, vector<384x32xf32>, vector<512x32xf32> -> vector<512x32xf32>
    %c0_3 = arith.constant 0 : index
    %c0_4 = arith.constant 0 : index
    %8 = vector.load %arg3[%c0_3, %c0_4] : memref<512x32xf32, #tpu.memory_space<vmem>>, vector<512x32xf32>
    tpu.vector_store %arg3[%c0_3, %c0_4], %7 {strides = array<i32>} : memref<512x32xf32, #tpu.memory_space<vmem>>, vector<512x32xf32>,
    return
  }
  func.func @transform_0(%arg0: i32) -> (i32, i32) {
    %c0_i32 = arith.constant 0 : i32
    %c0_i32_0 = arith.constant 0 : i32
    return %arg0, %c0_i32 : i32, i32
  }
  func.func @transform_1(%arg0: i32) -> (i32, i32) {
    %c0_i32 = arith.constant 0 : i32
    %c0_i32_0 = arith.constant 0 : i32
    %c0_i32_1 = arith.constant 0 : i32
    return %c0_i32, %c0_i32_0 : i32, i32
  }
  func.func @transform_2(%arg0: i32) -> (i32, i32) {
    %c0_i32 = arith.constant 0 : i32
    %c0_i32_0 = arith.constant 0 : i32
    return %arg0, %c0_i32 : i32, i32
  }
}

</mosaic_0001>

<bundles_post_ra>
// kernel: tpu_custom_call.1
= control target key start
LH: loop header
LB: loop body
LE: loop exit
PB: predicated region body
PF: predicated region fallthrough
CT: control target
= control target key end

     0   :  { %s3281_s9 = smov 0   ;;  %s3283_s10 = smov 0   ;;  %s4649_s0 = inlined_call_operand.vmem [shape: s32[1000,1], index: 0, kind: input, shape index: {}]   ;;  %s4650_s1 = inlined_call_operand.vmem [shape: f32[384,32], index: 1, kind: input, shape index: {}]   ;;  %s4651_s2 = inlined_call_operand.vmem [shape: f32[1000,32], index: 2, kind: output, shape index: {}]  }
   0x1   :  { %s3285_s11 = smov 0  }
   0x2 LB: > { %s3294_s12 = sadd.s32 4294967295, %s3229_s11   ;;  %s3296_s13 = sadd.s32 1, %s3229_s11   ;;  %s3229_s11 = sphi %s3285_s11, %s4660_s11   ;;  %s3225_s10 = sphi %s3283_s10, %s4659_s10   ;;  %s3221_s9 = sphi %s3281_s9, %s4658_s9  }
   0x3   : > { %s63_s14 = ssub.s32 %s3229_s11, %s3296_s13  ;;  %s66_s15 = sadd.s32 1, %s3225_s10 }
   0x4   : > { %p64_p0 = scmp.eq.s32.totalorder %s63_s14, 0  ;;  %p76_p1 = scmp.ne.s32.totalorder %s3225_s10, %s3221_s9 }
   0x5   : > { %p77_p2 = scmp.eq.s32.totalorder %s3294_s12, 1  ;;  %p2354_p3 = scmp.ge.s32.totalorder %s3229_s11, 1 }
   0x6   : > { %s3304_s16 = scalar_select %p64_p0, %s3225_s10, %s66_s15  }
   0x7   : > { %p3306_p4 = por %p77_p2, %p76_p1  ;;  %p121_p5 = scmp.lt.s32.totalorder %s3229_s11, 3 }
   0x9   : > { %p122_p6 = pnand %p2354_p3, %p121_p5 }
   0xa   : > { %s3311_s18 = sshll.u32 (!%p122_p6), %s3294_s12, 6  ;;  %v1001_v0 = vld [vmem:[%s4650_s1] sm:$0xff] (!%p122_p6)  ;;  %v1002_v1 = vld [vmem:[%s4650_s1 + $0x8] sm:$0xff] (!%p122_p6)  ;;  %v1003_v2 = vld [vmem:[%s4650_s1 + $0x10] sm:$0xff] (!%p122_p6)  ;;  %v3263_v3 = vmov (!%p122_p6), 0   ;;  %v3264_v6 = vmov (!%p122_p6), 0.0|0.0  }
   0xb   : > { %125 = sbr.rel (%p122_p6) target bundleno = 632 (0x278), region = 28  ;;  %3174 = vset.pattern.permute.xlu1 (!%p122_p6), %v3263_v3  ;;  %3173 = vset.pattern.permute.xlu0 (!%p122_p6), %v3263_v3  ;;  %p151_p7 = scmp.lt.s32.totalorder (!%p122_p6), %s3311_s18, 124  ;;  %v2971_v4 = vpack.c.bf16 (!%p122_p6), %v1002_v1, %v1001_v0  ;;  %v1004_v5 = vld [vmem:[%s4650_s1 + $0x18] sm:$0xff] (!%p122_p6)  ;;  %v1005_v8 = vld [vmem:[%s4650_s1 + $0x20] sm:$0xff] (!%p122_p6)  ;;  %v1006_v9 = vld [vmem:[%s4650_s1 + $0x28] sm:$0xff] (!%p122_p6) }
   0xc   : > { %3050 = vmatprep.subr.bf16.mxu1 (!%p122_p6), %v3264_v6  ;;  %2970 = vmatprep.subr.bf16.mxu0 (!%p122_p6), %v3264_v6  ;;  %v2974_v7 = vpack.c.bf16 (!%p122_p6), %v1004_v5, %v1003_v2  ;;  %v2977_v12 = vpack.c.bf16 (!%p122_p6), %v1006_v9, %v1005_v8  ;;  %v1007_v13 = vld [vmem:[%s4650_s1 + $0x30] sm:$0xff] (!%p122_p6)  ;;  %v1008_v14 = vld [vmem:[%s4650_s1 + $0x38] sm:$0xff] (!%p122_p6)  ;;  %v1009_v18 = vld [vmem:[%s4650_s1 + $0x40] sm:$0xff] (!%p122_p6)  ;;  %s143_s14 = sand.u32 (!%p122_p6), 1, %s3221_s9  }
   0xd   : > { %3066 = vmatpush1.bf16.msra.mxu1 (!%p122_p6), %v2971_v4  ;;  %2972 = vmatpush1.bf16.msra.mxu0 (!%p122_p6), %v2971_v4  ;;  %v2980_v17 = vpack.c.bf16 (!%p122_p6), %v1008_v14, %v1007_v13  ;;  %v1010_v19 = vld [vmem:[%s4650_s1 + $0x48] sm:$0xff] (!%p122_p6)  ;;  %v1011_v23 = vld [vmem:[%s4650_s1 + $0x50] sm:$0xff] (!%p122_p6)  ;;  %v1012_v24 = vld [vmem:[%s4650_s1 + $0x58] sm:$0xff] (!%p122_p6)  ;;  %s2355_s15 = sshll.u32 (!%p122_p6), %s143_s14, 9 }
   0xe   : > { %3051 = vmatprep.subr.bf16.mxu1 (!%p122_p6), %v3264_v6  ;;  %2973 = vmatprep.subr.bf16.mxu0 (!%p122_p6), %v3264_v6  ;;  %v2983_v22 = vpack.c.bf16 (!%p122_p6), %v1010_v19, %v1009_v18  ;;  %v2986_v27 = vpack.c.bf16 (!%p122_p6), %v1012_v24, %v1011_v23  ;;  %v1013_v28 = vld [vmem:[%s4650_s1 + $0x60] sm:$0xff] (!%p122_p6)  ;;  %v1014_v29 = vld [vmem:[%s4650_s1 + $0x68] sm:$0xff] (!%p122_p6)  ;;  %v1015_v33 = vld [vmem:[%s4650_s1 + $0x70] sm:$0xff] (!%p122_p6)  ;;  %s4281_s19 = scalar_lea.vmem (!%p122_p6), [#allocation2], %s2355_s15  }
   0xf   : > { %v2989_v32 = vpack.c.bf16 (!%p122_p6), %v1014_v29, %v1013_v28  ;;  %v1016_v34 = vld [vmem:[%s4650_s1 + $0x78] sm:$0xff] (!%p122_p6)  ;;  %v1017_v38 = vld [vmem:[%s4650_s1 + $0x80] sm:$0xff] (!%p122_p6)  ;;  %v1018_v39 = vld [vmem:[%s4650_s1 + $0x88] sm:$0xff] (!%p122_p6) }
  0x10   : > { %v2992_v37 = vpack.c.bf16 (!%p122_p6), %v1016_v34, %v1015_v33  ;;  %v2995_v42 = vpack.c.bf16 (!%p122_p6), %v1018_v39, %v1017_v38  ;;  %v1019_v43 = vld [vmem:[%s4650_s1 + $0x90] sm:$0xff] (!%p122_p6)  ;;  %v1020_v44 = vld [vmem:[%s4650_s1 + $0x98] sm:$0xff] (!%p122_p6)  ;;  %v1021_v48 = vld [vmem:[%s4650_s1 + $0xa0] sm:$0xff] (!%p122_p6) }
  0x11   : > { %3067 = vmatpush1.bf16.msra.mxu1 (!%p122_p6), %v2974_v7  ;;  %2975 = vmatpush1.bf16.msra.mxu0 (!%p122_p6), %v2974_v7  ;;  %v2998_v47 = vpack.c.bf16 (!%p122_p6), %v1020_v44, %v1019_v43  ;;  %v1022_v49 = vld [vmem:[%s4650_s1 + $0xa8] sm:$0xff] (!%p122_p6)  ;;  %v1023_v53 = vld [vmem:[%s4650_s1 + $0xb0] sm:$0xff] (!%p122_p6)  ;;  %v1024_v54 = vld [vmem:[%s4650_s1 + $0xb8] sm:$0xff] (!%p122_p6) }
  0x12   : > { %s152_s27 = scalar_select %p151_p7, %s3311_s18, 124  ;;  %3052 = vmatprep.subr.bf16.mxu1 %v3264_v6  ;;  %2976 = vmatprep.subr.bf16.mxu0 %v3264_v6  ;;  %v3001_v52 = vpack.c.bf16 %v1022_v49, %v1021_v48  ;;  %v3004_v57 = vpack.c.bf16 %v1024_v54, %v1023_v53  ;;  %v1025_v58 = vld [vmem:[%s4650_s1 + $0xc0] sm:$0xff]  ;;  %v1026_v59 = vld [vmem:[%s4650_s1 + $0xc8] sm:$0xff]  ;;  %v1027_v63 = vld [vmem:[%s4650_s1 + $0xd0] sm:$0xff]  ;;  %v229_v49 = vlaneseq }
  0x13   : > { %v3007_v62 = vpack.c.bf16 %v1026_v59, %v1025_v58  ;;  %v1028_v0 = vld [vmem:[%s4650_s1 + $0xd8] sm:$0xff]  ;;  %v1029_v4 = vld [vmem:[%s4650_s1 + $0xe0] sm:$0xff]  ;;  %v1030_v5 = vld [vmem:[%s4650_s1 + $0xe8] sm:$0xff]  ;;  %s1892_s9 = ssub.s32 (%p3306_p4), 125, %s3311_s18  ;;  %s2759_s20 = sshll.u32 (%p3306_p4), %s3294_s12, 9 }
  0x14   : > { %s2357_s4 = sshll.u32 %s152_s27, 3  ;;  %v3010_v3 = vpack.c.bf16 %v1028_v0, %v1027_v63  ;;  %v3013_v9 = vpack.c.bf16 %v1030_v5, %v1029_v4  ;;  %v1033_v14 = vld [vmem:[%s4650_s1 + $0x100] sm:$0xff]  ;;  %v1038_v63 = vld [vmem:[%s4650_s1 + $0x128] sm:$0xff]  ;;  %v1040_v4 = vld [vmem:[%s4650_s1 + $0x138] sm:$0xff]  ;;  %p1893_p8 = scmp.lt.s32.totalorder (%p3306_p4), %s1892_s9, 64 }
  0x15   : > { %s3340_s7 = scalar_lea.vmem %s4649_s0, %s2357_s4  ;;  %3068 = vmatpush1.bf16.msra.mxu1 %v2977_v12  ;;  %2978 = vmatpush1.bf16.msra.mxu0 %v2977_v12  ;;  %s4450_s23 = scalar_lea.vmem (%p3306_p4), %s4651_s2, %s2759_s20  }
  0x16   : > { %v214_v10 = vld [vmem:[%s3340_s7 + $0x188] sm:$0xff]  ;;  %v213_v11 = vld [vmem:[%s3340_s7 + $0x180] sm:$0xff]  ;;  %v167_v20 = vld [vmem:[%s3340_s7 + $0x10] sm:$0xff]  ;;  %3053 = vmatprep.subr.bf16.mxu1 %v3264_v6  ;;  %2979 = vmatprep.subr.bf16.mxu0 %v3264_v6 }
  0x17   : > { %381 = vperm.xlu1 %3174, %v214_v10   ;;  %378 = vperm.xlu0 %3173, %v213_v11   ;;  %v166_v15 = vld [vmem:[%s3340_s7 + $0x8] sm:$0xff]  ;;  %v165_v16 = vld [vmem:[%s3340_s7] sm:$0xff]  ;;  %v215_v21 = vld [vmem:[%s3340_s7 + $0x190] sm:$0xff] }
  0x18   : > { %v168_v25 = vld [vmem:[%s3340_s7 + $0x18] sm:$0xff]  ;;  %v169_v30 = vld [vmem:[%s3340_s7 + $0x20] sm:$0xff]  ;;  %v170_v35 = vld [vmem:[%s3340_s7 + $0x28] sm:$0xff] }
  0x19   : > { %3069 = vmatpush1.bf16.msra.mxu1 %v2980_v17  ;;  %2981 = vmatpush1.bf16.msra.mxu0 %v2980_v17  ;;  %v216_v26 = vld [vmem:[%s3340_s7 + $0x198] sm:$0xff]  ;;  %v217_v31 = vld [vmem:[%s3340_s7 + $0x1a0] sm:$0xff]  ;;  %v218_v36 = vld [vmem:[%s3340_s7 + $0x1a8] sm:$0xff] }
  0x1a   : > { %3054 = vmatprep.subr.bf16.mxu1 %v3264_v6  ;;  %2982 = vmatprep.subr.bf16.mxu0 %v3264_v6  ;;  %v171_v40 = vld [vmem:[%s3340_s7 + $0x30] sm:$0xff]  ;;  %v172_v45 = vld [vmem:[%s3340_s7 + $0x38] sm:$0xff]  ;;  %v173_v50 = vld [vmem:[%s3340_s7 + $0x40] sm:$0xff] }
  0x1b   : > { %237 = vperm.xlu1 %3174, %v166_v15   ;;  %234 = vperm.xlu0 %3173, %v165_v16   ;;  %v219_v41 = vld [vmem:[%s3340_s7 + $0x1b0] sm:$0xff]  ;;  %v220_v46 = vld [vmem:[%s3340_s7 + $0x1b8] sm:$0xff]  ;;  %v221_v51 = vld [vmem:[%s3340_s7 + $0x1c0] sm:$0xff] }
  0x1c   : > { %v174_v55 = vld [vmem:[%s3340_s7 + $0x48] sm:$0xff]  ;;  %v175_v60 = vld [vmem:[%s3340_s7 + $0x50] sm:$0xff]  ;;  %v176_v1 = vld [vmem:[%s3340_s7 + $0x58] sm:$0xff] }
  0x1d   : > { %3070 = vmatpush1.bf16.msra.mxu1 %v2983_v22  ;;  %2984 = vmatpush1.bf16.msra.mxu0 %v2983_v22  ;;  %v222_v56 = vld [vmem:[%s3340_s7 + $0x1c8] sm:$0xff]  ;;  %v223_v61 = vld [vmem:[%s3340_s7 + $0x1d0] sm:$0xff]  ;;  %v224_v2 = vld [vmem:[%s3340_s7 + $0x1d8] sm:$0xff] }
  0x1e   : > { %3055 = vmatprep.subr.bf16.mxu1 %v3264_v6  ;;  %2985 = vmatprep.subr.bf16.mxu0 %v3264_v6  ;;  %v177_v7 = vld [vmem:[%s3340_s7 + $0x60] sm:$0xff]  ;;  %v1031_v10 = vld [vmem:[%s4650_s1 + $0xf0] sm:$0xff]  ;;  %v1032_v11 = vld [vmem:[%s4650_s1 + $0xf8] sm:$0xff] }
  0x1f   : > { %240 = vperm.xlu1 %3174, %v167_v20   ;;  %384 = vperm.xlu0 %3173, %v215_v21   ;;  %v225_v8 = vld [vmem:[%s3340_s7 + $0x1e0] sm:$0xff]  ;;  %v178_v12 = vld [vmem:[%s3340_s7 + $0x68] sm:$0xff]  ;;  %v3016_v16 = vpack.c.bf16 %v1032_v11, %v1031_v10  ;;  %v179_v17 = vld [vmem:[%s3340_s7 + $0x70] sm:$0xff] }
  0x20   : > { %v226_v13 = vld [vmem:[%s3340_s7 + $0x1e8] sm:$0xff]  ;;  %v227_v18 = vld [vmem:[%s3340_s7 + $0x1f0] sm:$0xff]  ;;  %v180_v20 = vld [vmem:[%s3340_s7 + $0x78] sm:$0xff] }
  0x21   : > { %3071 = vmatpush1.bf16.msra.mxu1 %v2986_v27  ;;  %2987 = vmatpush1.bf16.msra.mxu0 %v2986_v27  ;;  %v1034_v15 = vld [vmem:[%s4650_s1 + $0x108] sm:$0xff]  ;;  %v228_v21 = vld [vmem:[%s3340_s7 + $0x1f8] sm:$0xff]  ;;  %v183_v24 = vld [vmem:[%s3340_s7 + $0x90] sm:$0xff] }
  0x22   : > { %3056 = vmatprep.subr.bf16.mxu1 %v3264_v6  ;;  %2988 = vmatprep.subr.bf16.mxu0 %v3264_v6  ;;  %v3484_v19 = vpack.c.bf16 %v1034_v15, %v1033_v14  ;;  %v182_v22 = vld [vmem:[%s3340_s7 + $0x88] sm:$0xff]  ;;  %v184_v23 = vld [vmem:[%s3340_s7 + $0x98] sm:$0xff]  ;;  %v187_v28 = vld [vmem:[%s3340_s7 + $0xb0] sm:$0xff] }
  0x23   : > { %243 = vperm.xlu1 %3174, %v168_v25   ;;  %387 = vperm.xlu0 %3173, %v216_v26   ;;  %v186_v25 = vld [vmem:[%s3340_s7 + $0xa8] sm:$0xff]  ;;  %v185_v26 = vld [vmem:[%s3340_s7 + $0xa0] sm:$0xff]  ;;  %v188_v27 = vld [vmem:[%s3340_s7 + $0xb8] sm:$0xff] }
  0x24   : > { %v190_v29 = vld [vmem:[%s3340_s7 + $0xc8] sm:$0xff]  ;;  %v193_v34 = vld [vmem:[%s3340_s7 + $0xe0] sm:$0xff]  ;;  %v200_v39 = vld [vmem:[%s3340_s7 + $0x118] sm:$0xff] }
  0x25   : > { %3072 = vmatpush1.bf16.msra.mxu1 %v2989_v32  ;;  %2990 = vmatpush1.bf16.msra.mxu0 %v2989_v32  ;;  %v191_v32 = vld [vmem:[%s3340_s7 + $0xd0] sm:$0xff]  ;;  %v194_v33 = vld [vmem:[%s3340_s7 + $0xe8] sm:$0xff]  ;;  %v197_v38 = vld [vmem:[%s3340_s7 + $0x100] sm:$0xff] }
  0x26   : > { %3057 = vmatprep.subr.bf16.mxu1 %v3264_v6  ;;  %2991 = vmatprep.subr.bf16.mxu0 %v3264_v6  ;;  %v204_v43 = vld [vmem:[%s3340_s7 + $0x138] sm:$0xff]  ;;  %v203_v44 = vld [vmem:[%s3340_s7 + $0x130] sm:$0xff]  ;;  %v1042_v10 = vld [vmem:[%s4650_s1 + $0x148] sm:$0xff] }
  0x27   : > { %246 = vperm.xlu1 %3174, %v169_v30   ;;  %390 = vperm.xlu0 %3173, %v217_v31   ;;  %v189_v30 = vld [vmem:[%s3340_s7 + $0xc0] sm:$0xff]  ;;  %v192_v31 = vld [vmem:[%s3340_s7 + $0xd8] sm:$0xff]  ;;  %v207_v48 = vld [vmem:[%s3340_s7 + $0x150] sm:$0xff] }
  0x28   : > { %v212_v53 = vld [vmem:[%s3340_s7 + $0x178] sm:$0xff]  ;;  %v211_v54 = vld [vmem:[%s3340_s7 + $0x170] sm:$0xff] }
  0x29   : > { %3073 = vmatpush1.bf16.msra.mxu1 %v2992_v37  ;;  %2993 = vmatpush1.bf16.msra.mxu0 %v2992_v37  ;;  %v198_v37 = vld [vmem:[%s3340_s7 + $0x108] sm:$0xff]  ;;  %v1043_v14 = vld [vmem:[%s4650_s1 + $0x150] sm:$0xff]  ;;  %v1044_v15 = vld [vmem:[%s4650_s1 + $0x158] sm:$0xff] }
  0x2a   : > { %3058 = vmatprep.subr.bf16.mxu1 %v3264_v6  ;;  %2994 = vmatprep.subr.bf16.mxu0 %v3264_v6 }
  0x2b   : > { %249 = vperm.xlu1 %3174, %v170_v35   ;;  %393 = vperm.xlu0 %3173, %v218_v36   ;;  %v196_v35 = vld [vmem:[%s3340_s7 + $0xf8] sm:$0xff]  ;;  %v195_v36 = vld [vmem:[%s3340_s7 + $0xf0] sm:$0xff] }
  0x2d   : > { %3074 = vmatpush1.bf16.msra.mxu1 %v2995_v42  ;;  %2996 = vmatpush1.bf16.msra.mxu0 %v2995_v42  ;;  %v201_v42 = vld [vmem:[%s3340_s7 + $0x120] sm:$0xff] }
  0x2e   : > { %3059 = vmatprep.subr.bf16.mxu1 %v3264_v6  ;;  %2997 = vmatprep.subr.bf16.mxu0 %v3264_v6 }
  0x2f   : > { %252 = vperm.xlu1 %3174, %v171_v40   ;;  %396 = vperm.xlu0 %3173, %v219_v41   ;;  %v199_v40 = vld [vmem:[%s3340_s7 + $0x110] sm:$0xff]  ;;  %v202_v41 = vld [vmem:[%s3340_s7 + $0x128] sm:$0xff] }
  0x31   : > { %3075 = vmatpush1.bf16.msra.mxu1 %v2998_v47  ;;  %2999 = vmatpush1.bf16.msra.mxu0 %v2998_v47  ;;  %v208_v47 = vld [vmem:[%s3340_s7 + $0x158] sm:$0xff] }
  0x32   : > { %3060 = vmatprep.subr.bf16.mxu1 %v3264_v6  ;;  %3000 = vmatprep.subr.bf16.mxu0 %v3264_v6 }
  0x33   : > { %255 = vperm.xlu1 %3174, %v172_v45   ;;  %399 = vperm.xlu0 %3173, %v220_v46   ;;  %v206_v45 = vld [vmem:[%s3340_s7 + $0x148] sm:$0xff]  ;;  %v205_v46 = vld [vmem:[%s3340_s7 + $0x140] sm:$0xff] }
  0x35   : > { %3076 = vmatpush1.bf16.msra.mxu1 %v3001_v52  ;;  %3002 = vmatpush1.bf16.msra.mxu0 %v3001_v52  ;;  %v3519_v52 = vand.u32 127, %v229_v49 }
  0x36   : > { %3061 = vmatprep.subr.bf16.mxu1 %v3264_v6  ;;  %3003 = vmatprep.subr.bf16.mxu0 %v3264_v6 }
  0x37   : > { %258 = vperm.xlu1 %3174, %v173_v50   ;;  %402 = vperm.xlu0 %3173, %v221_v51   ;;  %v210_v50 = vld [vmem:[%s3340_s7 + $0x168] sm:$0xff]  ;;  %v209_v51 = vld [vmem:[%s3340_s7 + $0x160] sm:$0xff] }
  0x39   : > { %3077 = vmatpush1.bf16.msra.mxu1 %v3004_v57  ;;  %3005 = vmatpush1.bf16.msra.mxu0 %v3004_v57  ;;  %v1036_v57 = vld [vmem:[%s4650_s1 + $0x118] sm:$0xff] }
  0x3a   : > { %3062 = vmatprep.subr.bf16.mxu1 %v3264_v6  ;;  %3006 = vmatprep.subr.bf16.mxu0 %v3264_v6 }
  0x3b   : > { %261 = vperm.xlu1 %3174, %v174_v55   ;;  %405 = vperm.xlu0 %3173, %v222_v56   ;;  %v3524_v55 = vadd.s32 128, %v3519_v52  ;;  %v1035_v56 = vld [vmem:[%s4650_s1 + $0x110] sm:$0xff] }
  0x3d   : > { %3078 = vmatpush1.bf16.msra.mxu1 %v3007_v62  ;;  %3008 = vmatpush1.bf16.msra.mxu0 %v3007_v62  ;;  %v1037_v62 = vld [vmem:[%s4650_s1 + $0x120] sm:$0xff] }
  0x3e   : > { %3063 = vmatprep.subr.bf16.mxu1 %v3264_v6  ;;  %3009 = vmatprep.subr.bf16.mxu0 %v3264_v6 }
  0x3f   : > { %264 = vperm.xlu1 %3174, %v175_v60   ;;  %408 = vperm.xlu0 %3173, %v223_v61   ;;  %v3022_v60 = vpack.c.bf16 %v1036_v57, %v1035_v56  ;;  %v3265_v61 = vmov 1.0  }
  0x41   : > { %3079 = vmatpush1.bf16.msra.mxu1 %v3010_v3  ;;  %3011 = vmatpush1.bf16.msra.mxu0 %v3010_v3  ;;  %v1039_v3 = vld [vmem:[%s4650_s1 + $0x130] sm:$0xff] }
  0x42   : > { %3064 = vmatprep.subr.bf16.mxu1 %v3264_v6  ;;  %3012 = vmatprep.subr.bf16.mxu0 %v3264_v6 }
  0x43   : > { %267 = vperm.xlu1 %3174, %v176_v1   ;;  %411 = vperm.xlu0 %3173, %v224_v2   ;;  %v3026_v2 = vpack.c.bf16 %v1038_v63, %v1037_v62 }
  0x45   : > { %3080 = vmatpush1.bf16.msra.mxu1 %v3013_v9  ;;  %3014 = vmatpush1.bf16.msra.mxu0 %v3013_v9  ;;  %v1041_v9 = vld [vmem:[%s4650_s1 + $0x140] sm:$0xff] }
  0x46   : > { %3065 = vmatprep.subr.bf16.mxu1 %v3264_v6  ;;  %3015 = vmatprep.subr.bf16.mxu0 %v3264_v6  ;;  %v181_v6 = vld [vmem:[%s3340_s7 + $0x80] sm:$0xff] }
  0x47   : > { %270 = vperm.xlu1 %3174, %v177_v7   ;;  %414 = vperm.xlu0 %3173, %v225_v8   ;;  %v3030_v8 = vpack.c.bf16 %v1040_v4, %v1039_v3 }
  0x49   : > { %3081 = vmatpush1.bf16.msra.mxu1 %v3016_v16  ;;  %3017 = vmatpush1.bf16.msra.mxu0 %v3016_v16 }
  0x4a   : > { %3019 = vmatprep.subr.bf16.mxu1 %v3484_v19 }
  0x4b   : > { %273 = vperm.xlu1 %3174, %v178_v12   ;;  %417 = vperm.xlu0 %3173, %v226_v13   ;;  %v3034_v13 = vpack.c.bf16 %v1042_v10, %v1041_v9 }
  0x4f   : > { %276 = vperm.xlu1 %3174, %v179_v17   ;;  %420 = vperm.xlu0 %3173, %v227_v18   ;;  %v3038_v18 = vpack.c.bf16 %v1044_v15, %v1043_v14 }
  0x53   : > { %279 = vperm.xlu1 %3174, %v180_v20   ;;  %423 = vperm.xlu0 %3173, %v228_v21   ;;  %v1046_v20 = vld [vmem:[%s4650_s1 + $0x168] sm:$0xff] }
  0x57   : > { %285 = vperm.xlu1 %3174, %v182_v22   ;;  %282 = vperm.xlu0 %3173, %v181_v6  }
  0x5b   : > { %291 = vperm.xlu1 %3174, %v184_v23   ;;  %288 = vperm.xlu0 %3173, %v183_v24   ;;  %v1047_v23 = vld [vmem:[%s4650_s1 + $0x170] sm:$0xff]  ;;  %v1048_v24 = vld [vmem:[%s4650_s1 + $0x178] sm:$0xff] }
  0x5f   : > { %297 = vperm.xlu1 %3174, %v186_v25   ;;  %294 = vperm.xlu0 %3173, %v185_v26  }
  0x63   : > { %303 = vperm.xlu1 %3174, %v188_v27   ;;  %300 = vperm.xlu0 %3173, %v187_v28   ;;  %v3046_v27 = vpack.c.bf16 %v1048_v24, %v1047_v23 }
  0x67   : > { %309 = vperm.xlu1 %3174, %v190_v29   ;;  %306 = vperm.xlu0 %3173, %v189_v30  }
  0x6b   : > { %315 = vperm.xlu1 %3174, %v192_v31   ;;  %312 = vperm.xlu0 %3173, %v191_v32  }
  0x6f   : > { %321 = vperm.xlu1 %3174, %v194_v33   ;;  %318 = vperm.xlu0 %3173, %v193_v34  }
  0x73   : > { %327 = vperm.xlu1 %3174, %v196_v35   ;;  %324 = vperm.xlu0 %3173, %v195_v36  }
  0x77   : > { %333 = vperm.xlu1 %3174, %v198_v37   ;;  %330 = vperm.xlu0 %3173, %v197_v38  }
  0x7b   : > { %339 = vperm.xlu1 %3174, %v200_v39   ;;  %336 = vperm.xlu0 %3173, %v199_v40  }
  0x7f   : > { %345 = vperm.xlu1 %3174, %v202_v41   ;;  %342 = vperm.xlu0 %3173, %v201_v42  }
  0x83   : > { %351 = vperm.xlu1 %3174, %v204_v43   ;;  %348 = vperm.xlu0 %3173, %v203_v44  }
  0x87   : > { %357 = vperm.xlu1 %3174, %v206_v45   ;;  %354 = vperm.xlu0 %3173, %v205_v46   ;;  %v3811_v46 = vadd.s32 256, %v3519_v52 }
  0x8b   : > { %363 = vperm.xlu1 %3174, %v208_v47   ;;  %360 = vperm.xlu0 %3173, %v207_v48  }
  0x8f   : > { %369 = vperm.xlu1 %3174, %v210_v50   ;;  %366 = vperm.xlu0 %3173, %v209_v51  }
  0x93   : > { %375 = vperm.xlu1 %3174, %v212_v53   ;;  %372 = vperm.xlu0 %3173, %v211_v54  }
  0x96   : > { %v3532_v58 = vpop.permute.xlu1 %381  ;;  %v3534_v59 = vpop.permute.xlu0 %378 }
  0x97   : > { %vm570_vm0 = vcmp.eq.s32.totalorder %v3524_v55, %v3534_v59  ;;  %vm569_vm1 = vcmp.eq.s32.totalorder %v3519_v52, %v3534_v59  ;;  %vm573_vm2 = vcmp.eq.s32.totalorder %v3524_v55, %v3532_v58  ;;  %vm572_vm3 = vcmp.eq.s32.totalorder %v3519_v52, %v3532_v58 }
  0x98   : > { %2646 = vmatprep.mubr.msk.f32.mxu1 %vm570_vm0, %v3265_v61 }
  0x99   : > { %2647 = vmatmul.mubr.msk.f32.vlgmr.msra.gmra.mrb[0].mxu1 %vm569_vm1, %v3265_v61 }
  0x9a   : > { %v3550_v0 = vpop.permute.xlu1 %237  ;;  %v3552_v1 = vpop.permute.xlu0 %234  ;;  %2648 = vmatprep.mubr.msk.f32.mxu1 %vm573_vm2, %v3265_v61  ;;  %3021 = vmatpush3.bf16.msra.mxu1 %v3484_v19  ;;  %v1045_v19 = vld [vmem:[%s4650_s1 + $0x160] sm:$0xff] }
  0x9b   : > { %vm426_vm4 = vcmp.eq.s32.totalorder %v3524_v55, %v3552_v1  ;;  %vm425_vm5 = vcmp.eq.s32.totalorder %v3519_v52, %v3552_v1  ;;  %3023 = vmatprep.subr.bf16.mxu1 %v3022_v60  ;;  %vm429_vm6 = vcmp.eq.s32.totalorder %v3524_v55, %v3550_v0  ;;  %vm428_vm9 = vcmp.eq.s32.totalorder %v3519_v52, %v3550_v0 }
  0x9c   : > { %2550 = vmatprep.mubr.msk.f32.mxu0 %vm426_vm4, %v3265_v61  ;;  %v3042_v6 = vpack.c.bf16 %v1046_v20, %v1045_v19 }
  0x9d   : > { %2551 = vmatmul.mubr.msk.f32.vlgmr.msra.gmra.mrb[0].mxu0 %vm425_vm5, %v3265_v61  ;;  %2649 = vmatmul.mubr.msk.f32.gmra.mrb[2].mxu1 %vm572_vm3, %v3265_v61 }
  0x9e   : > { %v3573_v5 = vpop.permute.xlu1 %240  ;;  %2552 = vmatprep.mubr.msk.f32.mxu0 %vm429_vm6, %v3265_v61  ;;  %v3576_v7 = vpop.permute.xlu0 %384  ;;  %3025 = vmatpush3.bf16.msra.mxu1 %v3022_v60 }
  0x9f   : > { %vm576_vm7 = vcmp.eq.s32.totalorder %v3524_v55, %v3576_v7  ;;  %vm575_vm8 = vcmp.eq.s32.totalorder %v3519_v52, %v3576_v7  ;;  %3027 = vmatprep.subr.bf16.mxu1 %v3026_v2  ;;  %vm432_vm10 = vcmp.eq.s32.totalorder %v3524_v55, %v3573_v5  ;;  %vm431_vm13 = vcmp.eq.s32.totalorder %v3519_v52, %v3573_v5 }
  0xa0   : > { %2650 = vmatprep.mubr.msk.f32.mxu1 %vm576_vm7, %v3265_v61 }
  0xa1   : > { %2553 = vmatmul.mubr.msk.f32.gmra.mrb[2].mxu0 %vm428_vm9, %v3265_v61  ;;  %2651 = vmatmul.mubr.msk.f32.gmra.mrb[4].mxu1 %vm575_vm8, %v3265_v61 }
  0xa2   : > { %v3595_v11 = vpop.permute.xlu1 %243  ;;  %2554 = vmatprep.mubr.msk.f32.mxu0 %vm432_vm10, %v3265_v61  ;;  %v3598_v12 = vpop.permute.xlu0 %387  ;;  %3029 = vmatpush3.bf16.msra.mxu1 %v3026_v2 }
  0xa3   : > { %vm579_vm11 = vcmp.eq.s32.totalorder %v3524_v55, %v3598_v12  ;;  %vm578_vm12 = vcmp.eq.s32.totalorder %v3519_v52, %v3598_v12  ;;  %3031 = vmatprep.subr.bf16.mxu1 %v3030_v8  ;;  %vm435_vm14 = vcmp.eq.s32.totalorder %v3524_v55, %v3595_v11  ;;  %vm434_vm1 = vcmp.eq.s32.totalorder %v3519_v52, %v3595_v11 }
  0xa4   : > { %2652 = vmatprep.mubr.msk.f32.mxu1 %vm579_vm11, %v3265_v61 }
  0xa5   : > { %2555 = vmatmul.mubr.msk.f32.gmra.mrb[4].mxu0 %vm431_vm13, %v3265_v61  ;;  %2653 = vmatmul.mubr.msk.f32.gmra.mrb[6].mxu1 %vm578_vm12, %v3265_v61 }
  0xa6   : > { %v3617_v16 = vpop.permute.xlu1 %246  ;;  %2556 = vmatprep.mubr.msk.f32.mxu0 %vm435_vm14, %v3265_v61  ;;  %v3620_v17 = vpop.permute.xlu0 %390  ;;  %3033 = vmatpush3.bf16.msra.mxu1 %v3030_v8 }
  0xa7   : > { %vm582_vm15 = vcmp.eq.s32.totalorder %v3524_v55, %v3620_v17  ;;  %vm581_vm0 = vcmp.eq.s32.totalorder %v3519_v52, %v3620_v17  ;;  %3035 = vmatprep.subr.bf16.mxu1 %v3034_v13  ;;  %vm438_vm2 = vcmp.eq.s32.totalorder %v3524_v55, %v3617_v16  ;;  %vm437_vm5 = vcmp.eq.s32.totalorder %v3519_v52, %v3617_v16 }
  0xa8   : > { %2654 = vmatprep.mubr.msk.f32.mxu1 %vm582_vm15, %v3265_v61 }
  0xa9   : > { %2557 = vmatmul.mubr.msk.f32.gmra.mrb[6].mxu0 %vm434_vm1, %v3265_v61  ;;  %2655 = vmatmul.mubr.msk.f32.gmra.mrb[8].mxu1 %vm581_vm0, %v3265_v61 }
  0xaa   : > { %v3639_v21 = vpop.permute.xlu1 %249  ;;  %2558 = vmatprep.mubr.msk.f32.mxu0 %vm438_vm2, %v3265_v61  ;;  %v3642_v22 = vpop.permute.xlu0 %393  ;;  %3037 = vmatpush3.bf16.msra.mxu1 %v3034_v13 }
  0xab   : > { %vm585_vm3 = vcmp.eq.s32.totalorder %v3524_v55, %v3642_v22  ;;  %vm584_vm4 = vcmp.eq.s32.totalorder %v3519_v52, %v3642_v22  ;;  %3039 = vmatprep.subr.bf16.mxu1 %v3038_v18  ;;  %vm441_vm6 = vcmp.eq.s32.totalorder %v3524_v55, %v3639_v21  ;;  %vm440_vm9 = vcmp.eq.s32.totalorder %v3519_v52, %v3639_v21 }
  0xac   : > { %2656 = vmatprep.mubr.msk.f32.mxu1 %vm585_vm3, %v3265_v61 }
  0xad   : > { %2559 = vmatmul.mubr.msk.f32.gmra.mrb[8].mxu0 %vm437_vm5, %v3265_v61  ;;  %2657 = vmatmul.mubr.msk.f32.gmra.mrb[10].mxu1 %vm584_vm4, %v3265_v61 }
  0xae   : > { %v3661_v25 = vpop.permute.xlu1 %252  ;;  %2560 = vmatprep.mubr.msk.f32.mxu0 %vm441_vm6, %v3265_v61  ;;  %v3664_v26 = vpop.permute.xlu0 %396  ;;  %3041 = vmatpush3.bf16.msra.mxu1 %v3038_v18 }
  0xaf   : > { %vm588_vm7 = vcmp.eq.s32.totalorder %v3524_v55, %v3664_v26  ;;  %vm587_vm8 = vcmp.eq.s32.totalorder %v3519_v52, %v3664_v26  ;;  %3043 = vmatprep.subr.bf16.mxu1 %v3042_v6  ;;  %vm444_vm10 = vcmp.eq.s32.totalorder %v3524_v55, %v3661_v25  ;;  %vm443_vm13 = vcmp.eq.s32.totalorder %v3519_v52, %v3661_v25 }
  0xb0   : > { %2658 = vmatprep.mubr.msk.f32.mxu1 %vm588_vm7, %v3265_v61 }
  0xb1   : > { %2561 = vmatmul.mubr.msk.f32.gmra.mrb[10].mxu0 %vm440_vm9, %v3265_v61  ;;  %2659 = vmatmul.mubr.msk.f32.gmra.mrb[12].mxu1 %vm587_vm8, %v3265_v61 }
  0xb2   : > { %v3677_v28 = vpop.permute.xlu1 %255  ;;  %2562 = vmatprep.mubr.msk.f32.mxu0 %vm444_vm10, %v3265_v61  ;;  %v3680_v29 = vpop.permute.xlu0 %399  ;;  %3045 = vmatpush3.bf16.msra.mxu1 %v3042_v6 }
  0xb3   : > { %vm591_vm11 = vcmp.eq.s32.totalorder %v3524_v55, %v3680_v29  ;;  %vm590_vm12 = vcmp.eq.s32.totalorder %v3519_v52, %v3680_v29  ;;  %3047 = vmatprep.subr.bf16.mxu1 %v3046_v27  ;;  %vm447_vm14 = vcmp.eq.s32.totalorder %v3524_v55, %v3677_v28  ;;  %vm446_vm1 = vcmp.eq.s32.totalorder %v3519_v52, %v3677_v28 }
  0xb4   : > { %2660 = vmatprep.mubr.msk.f32.mxu1 %vm591_vm11, %v3265_v61 }
  0xb5   : > { %2563 = vmatmul.mubr.msk.f32.gmra.mrb[12].mxu0 %vm443_vm13, %v3265_v61  ;;  %2661 = vmatmul.mubr.msk.f32.gmra.mrb[14].mxu1 %vm590_vm12, %v3265_v61 }
  0xb6   : > { %v3693_v30 = vpop.permute.xlu1 %258  ;;  %2564 = vmatprep.mubr.msk.f32.mxu0 %vm447_vm14, %v3265_v61  ;;  %v3696_v31 = vpop.permute.xlu0 %402  ;;  %3049 = vmatpush3.bf16.msra.mxu1 %v3046_v27 }
  0xb7   : > { %vm594_vm15 = vcmp.eq.s32.totalorder %v3524_v55, %v3696_v31  ;;  %vm593_vm0 = vcmp.eq.s32.totalorder %v3519_v52, %v3696_v31  ;;  %vm450_vm2 = vcmp.eq.s32.totalorder %v3524_v55, %v3693_v30  ;;  %vm449_vm5 = vcmp.eq.s32.totalorder %v3519_v52, %v3693_v30 }
  0xb8   : > { %2662 = vmatprep.mubr.msk.f32.mxu1 %vm594_vm15, %v3265_v61 }
  0xb9   : > { %2565 = vmatmul.mubr.msk.f32.gmra.mrb[14].mxu0 %vm446_vm1, %v3265_v61  ;;  %2663 = vmatmul.mubr.msk.f32.gmra.mrb[16].mxu1 %vm593_vm0, %v3265_v61 }
  0xba   : > { %v3709_v32 = vpop.permute.xlu1 %261  ;;  %2566 = vmatprep.mubr.msk.f32.mxu0 %vm450_vm2, %v3265_v61  ;;  %v3712_v33 = vpop.permute.xlu0 %405 }
  0xbb   : > { %vm597_vm3 = vcmp.eq.s32.totalorder %v3524_v55, %v3712_v33  ;;  %vm596_vm4 = vcmp.eq.s32.totalorder %v3519_v52, %v3712_v33  ;;  %vm453_vm6 = vcmp.eq.s32.totalorder %v3524_v55, %v3709_v32  ;;  %vm452_vm9 = vcmp.eq.s32.totalorder %v3519_v52, %v3709_v32 }
  0xbc   : > { %2664 = vmatprep.mubr.msk.f32.mxu1 %vm597_vm3, %v3265_v61 }
  0xbd   : > { %2567 = vmatmul.mubr.msk.f32.gmra.mrb[16].mxu0 %vm449_vm5, %v3265_v61  ;;  %2665 = vmatmul.mubr.msk.f32.gmra.mrb[18].mxu1 %vm596_vm4, %v3265_v61 }
  0xbe   : > { %v3725_v34 = vpop.permute.xlu1 %264  ;;  %2568 = vmatprep.mubr.msk.f32.mxu0 %vm453_vm6, %v3265_v61  ;;  %v3728_v35 = vpop.permute.xlu0 %408 }
  0xbf   : > { %vm600_vm7 = vcmp.eq.s32.totalorder %v3524_v55, %v3728_v35  ;;  %vm599_vm8 = vcmp.eq.s32.totalorder %v3519_v52, %v3728_v35  ;;  %vm456_vm10 = vcmp.eq.s32.totalorder %v3524_v55, %v3725_v34  ;;  %vm455_vm13 = vcmp.eq.s32.totalorder %v3519_v52, %v3725_v34 }
  0xc0   : > { %2666 = vmatprep.mubr.msk.f32.mxu1 %vm600_vm7, %v3265_v61 }
  0xc1   : > { %2569 = vmatmul.mubr.msk.f32.gmra.mrb[18].mxu0 %vm452_vm9, %v3265_v61  ;;  %2667 = vmatmul.mubr.msk.f32.gmra.mrb[20].mxu1 %vm599_vm8, %v3265_v61 }
  0xc2   : > { %v3741_v36 = vpop.permute.xlu1 %267  ;;  %2570 = vmatprep.mubr.msk.f32.mxu0 %vm456_vm10, %v3265_v61  ;;  %v3744_v37 = vpop.permute.xlu0 %411 }
  0xc3   : > { %vm603_vm11 = vcmp.eq.s32.totalorder %v3524_v55, %v3744_v37  ;;  %vm602_vm12 = vcmp.eq.s32.totalorder %v3519_v52, %v3744_v37  ;;  %vm459_vm14 = vcmp.eq.s32.totalorder %v3524_v55, %v3741_v36  ;;  %vm458_vm1 = vcmp.eq.s32.totalorder %v3519_v52, %v3741_v36 }
  0xc4   : > { %2668 = vmatprep.mubr.msk.f32.mxu1 %vm603_vm11, %v3265_v61 }
  0xc5   : > { %2571 = vmatmul.mubr.msk.f32.gmra.mrb[20].mxu0 %vm455_vm13, %v3265_v61  ;;  %2669 = vmatmul.mubr.msk.f32.gmra.mrb[22].mxu1 %vm602_vm12, %v3265_v61 }
  0xc6   : > { %v3757_v38 = vpop.permute.xlu1 %270  ;;  %2572 = vmatprep.mubr.msk.f32.mxu0 %vm459_vm14, %v3265_v61  ;;  %v3760_v39 = vpop.permute.xlu0 %414 }
  0xc7   : > { %vm606_vm15 = vcmp.eq.s32.totalorder %v3524_v55, %v3760_v39  ;;  %vm605_vm0 = vcmp.eq.s32.totalorder %v3519_v52, %v3760_v39  ;;  %vm462_vm2 = vcmp.eq.s32.totalorder %v3524_v55, %v3757_v38  ;;  %vm461_vm5 = vcmp.eq.s32.totalorder %v3519_v52, %v3757_v38 }
  0xc8   : > { %2670 = vmatprep.mubr.msk.f32.mxu1 %vm606_vm15, %v3265_v61  ;;  %vm427_vm15 = vcmp.eq.s32.totalorder %v3811_v46, %v3552_v1 }
  0xc9   : > { %2573 = vmatmul.mubr.msk.f32.gmra.mrb[22].mxu0 %vm458_vm1, %v3265_v61  ;;  %2671 = vmatmul.mubr.msk.f32.gmra.mrb[24].mxu1 %vm605_vm0, %v3265_v61  ;;  %vm430_vm0 = vcmp.eq.s32.totalorder %v3811_v46, %v3550_v0 }
  0xca   : > { %v3773_v40 = vpop.permute.xlu1 %273  ;;  %2574 = vmatprep.mubr.msk.f32.mxu0 %vm462_vm2, %v3265_v61  ;;  %v3776_v41 = vpop.permute.xlu0 %417 }
  0xcb   : > { %vm609_vm3 = vcmp.eq.s32.totalorder %v3524_v55, %v3776_v41  ;;  %vm608_vm4 = vcmp.eq.s32.totalorder %v3519_v52, %v3776_v41  ;;  %vm465_vm6 = vcmp.eq.s32.totalorder %v3524_v55, %v3773_v40  ;;  %vm464_vm9 = vcmp.eq.s32.totalorder %v3519_v52, %v3773_v40 }
  0xcc   : > { %2672 = vmatprep.mubr.msk.f32.mxu1 %vm609_vm3, %v3265_v61  ;;  %vm433_vm3 = vcmp.eq.s32.totalorder %v3811_v46, %v3573_v5 }
  0xcd   : > { %2575 = vmatmul.mubr.msk.f32.gmra.mrb[24].mxu0 %vm461_vm5, %v3265_v61  ;;  %2673 = vmatmul.mubr.msk.f32.gmra.mrb[26].mxu1 %vm608_vm4, %v3265_v61  ;;  %vm436_vm5 = vcmp.eq.s32.totalorder %v3811_v46, %v3595_v11 }
  0xce   : > { %v3789_v42 = vpop.permute.xlu1 %276  ;;  %2576 = vmatprep.mubr.msk.f32.mxu0 %vm465_vm6, %v3265_v61  ;;  %v3792_v43 = vpop.permute.xlu0 %420 }
  0xcf   : > { %vm612_vm7 = vcmp.eq.s32.totalorder %v3524_v55, %v3792_v43  ;;  %vm611_vm8 = vcmp.eq.s32.totalorder %v3519_v52, %v3792_v43  ;;  %vm468_vm10 = vcmp.eq.s32.totalorder %v3524_v55, %v3789_v42  ;;  %vm467_vm13 = vcmp.eq.s32.totalorder %v3519_v52, %v3789_v42 }
  0xd0   : > { %2674 = vmatprep.mubr.msk.f32.mxu1 %vm612_vm7, %v3265_v61  ;;  %vm439_vm7 = vcmp.eq.s32.totalorder %v3811_v46, %v3617_v16 }
  0xd1   : > { %2577 = vmatmul.mubr.msk.f32.gmra.mrb[26].mxu0 %vm464_vm9, %v3265_v61  ;;  %2675 = vmatmul.mubr.msk.f32.gmra.mrb[28].mxu1 %vm611_vm8, %v3265_v61  ;;  %vm442_vm9 = vcmp.eq.s32.totalorder %v3811_v46, %v3639_v21 }
  0xd2   : > { %v3805_v44 = vpop.permute.xlu1 %279  ;;  %2578 = vmatprep.mubr.msk.f32.mxu0 %vm468_vm10, %v3265_v61  ;;  %v3808_v45 = vpop.permute.xlu0 %423 }
  0xd3   : > { %vm615_vm11 = vcmp.eq.s32.totalorder %v3524_v55, %v3808_v45  ;;  %vm614_vm12 = vcmp.eq.s32.totalorder %v3519_v52, %v3808_v45  ;;  %vm471_vm14 = vcmp.eq.s32.totalorder %v3524_v55, %v3805_v44  ;;  %vm470_vm1 = vcmp.eq.s32.totalorder %v3519_v52, %v3805_v44 }
  0xd4   : > { %2676 = vmatprep.mubr.msk.f32.mxu1 %vm615_vm11, %v3265_v61  ;;  %vm445_vm11 = vcmp.eq.s32.totalorder %v3811_v46, %v3661_v25 }
  0xd5   : > { %2579 = vmatmul.mubr.msk.f32.gmra.mrb[28].mxu0 %vm467_vm13, %v3265_v61  ;;  %2677 = vmatmul.mubr.msk.f32.gmra.mrb[30].mxu1 %vm614_vm12, %v3265_v61  ;;  %vm448_vm13 = vcmp.eq.s32.totalorder %v3811_v46, %v3677_v28 }
  0xd6   : > { %2580 = vmatprep.mubr.msk.f32.mxu0 %vm471_vm14, %v3265_v61  ;;  %2874 = vmatprep.mubr.msk.f32.mxu1 %vm427_vm15, %v3265_v61  ;;  %v3828_v47 = vpop.permute.xlu0 %282  ;;  %v3830_v48 = vpop.permute.xlu1 %285  ;;  %vm451_vm15 = vcmp.eq.s32.totalorder %v3811_v46, %v3693_v30 }
  0xd7   : > { %vm474_vm2 = vcmp.eq.s32.totalorder %v3524_v55, %v3828_v47  ;;  %vm473_vm4 = vcmp.eq.s32.totalorder %v3519_v52, %v3828_v47  ;;  %vm477_vm6 = vcmp.eq.s32.totalorder %v3524_v55, %v3830_v48  ;;  %vm476_vm8 = vcmp.eq.s32.totalorder %v3519_v52, %v3830_v48 }
  0xd9   : > { %2581 = vmatmul.mubr.msk.f32.gmra.mrb[30].mxu0 %vm470_vm1, %v3265_v61  ;;  %2875 = vmatmul.mubr.msk.f32.vlgmr.msra.gmra.mrb[32].mxu1 %vm430_vm0, %v3265_v61  ;;  %vm454_vm1 = vcmp.eq.s32.totalorder %v3811_v46, %v3709_v32 }
  0xda   : > { %2582 = vmatprep.mubr.msk.f32.mxu0 %vm474_vm2, %v3265_v61  ;;  %2877 = vmatprep.mubr.msk.f32.mxu1 %vm433_vm3, %v3265_v61  ;;  %v3844_v49 = vpop.permute.xlu0 %288  ;;  %v3850_v50 = vpop.permute.xlu1 %291  ;;  %vm457_vm3 = vcmp.eq.s32.totalorder %v3811_v46, %v3725_v34 }
  0xdb   : > { %vm480_vm10 = vcmp.eq.s32.totalorder %v3524_v55, %v3844_v49  ;;  %vm479_vm12 = vcmp.eq.s32.totalorder %v3519_v52, %v3844_v49  ;;  %vm483_vm14 = vcmp.eq.s32.totalorder %v3524_v55, %v3850_v50  ;;  %vm482_vm0 = vcmp.eq.s32.totalorder %v3519_v52, %v3850_v50 }
  0xdd   : > { %2583 = vmatmul.mubr.msk.f32.gmra.mrb[32].mxu0 %vm473_vm4, %v3265_v61  ;;  %2878 = vmatmul.mubr.msk.f32.gmra.mrb[34].mxu1 %vm436_vm5, %v3265_v61  ;;  %vm460_vm5 = vcmp.eq.s32.totalorder %v3811_v46, %v3741_v36 }
  0xde   : > { %2584 = vmatprep.mubr.msk.f32.mxu0 %vm477_vm6, %v3265_v61  ;;  %2880 = vmatprep.mubr.msk.f32.mxu1 %vm439_vm7, %v3265_v61  ;;  %v3860_v51 = vpop.permute.xlu0 %294  ;;  %v3874_v53 = vpop.permute.xlu1 %297  ;;  %vm463_vm7 = vcmp.eq.s32.totalorder %v3811_v46, %v3757_v38 }
  0xdf   : > { %vm486_vm2 = vcmp.eq.s32.totalorder %v3524_v55, %v3860_v51  ;;  %vm485_vm4 = vcmp.eq.s32.totalorder %v3519_v52, %v3860_v51  ;;  %vm489_vm6 = vcmp.eq.s32.totalorder %v3524_v55, %v3874_v53 }
  0xe1   : > { %2585 = vmatmul.mubr.msk.f32.gmra.mrb[34].mxu0 %vm476_vm8, %v3265_v61  ;;  %2881 = vmatmul.mubr.msk.f32.gmra.mrb[36].mxu1 %vm442_vm9, %v3265_v61  ;;  %vm488_vm8 = vcmp.eq.s32.totalorder %v3519_v52, %v3874_v53  ;;  %vm466_vm9 = vcmp.eq.s32.totalorder %v3811_v46, %v3773_v40 }
  0xe2   : > { %2586 = vmatprep.mubr.msk.f32.mxu0 %vm480_vm10, %v3265_v61  ;;  %2883 = vmatprep.mubr.msk.f32.mxu1 %vm445_vm11, %v3265_v61  ;;  %v3886_v54 = vpop.permute.xlu0 %300  ;;  %v3894_v56 = vpop.permute.xlu1 %303  ;;  %vm469_vm11 = vcmp.eq.s32.totalorder %v3811_v46, %v3789_v42 }
  0xe3   : > { %vm492_vm10 = vcmp.eq.s32.totalorder %v3524_v55, %v3886_v54 }
  0xe5   : > { %2587 = vmatmul.mubr.msk.f32.gmra.mrb[36].mxu0 %vm479_vm12, %v3265_v61  ;;  %2884 = vmatmul.mubr.msk.f32.gmra.mrb[38].mxu1 %vm448_vm13, %v3265_v61  ;;  %vm491_vm12 = vcmp.eq.s32.totalorder %v3519_v52, %v3886_v54  ;;  %vm472_vm13 = vcmp.eq.s32.totalorder %v3811_v46, %v3805_v44 }
  0xe6   : > { %2588 = vmatprep.mubr.msk.f32.mxu0 %vm483_vm14, %v3265_v61  ;;  %2886 = vmatprep.mubr.msk.f32.mxu1 %vm451_vm15, %v3265_v61  ;;  %v3904_v57 = vpop.permute.xlu0 %306  ;;  %v310_v60 = vpop.permute.xlu1 %309  ;;  %vm495_vm14 = vcmp.eq.s32.totalorder %v3524_v55, %v3894_v56  ;;  %vm475_vm15 = vcmp.eq.s32.totalorder %v3811_v46, %v3828_v47 }
  0xe9   : > { %2589 = vmatmul.mubr.msk.f32.gmra.mrb[38].mxu0 %vm482_vm0, %v3265_v61  ;;  %2887 = vmatmul.mubr.msk.f32.gmra.mrb[40].mxu1 %vm454_vm1, %v3265_v61  ;;  %vm494_vm0 = vcmp.eq.s32.totalorder %v3519_v52, %v3894_v56  ;;  %vm478_vm1 = vcmp.eq.s32.totalorder %v3811_v46, %v3830_v48 }
  0xea   : > { %2590 = vmatprep.mubr.msk.f32.mxu0 %vm486_vm2, %v3265_v61  ;;  %2889 = vmatprep.mubr.msk.f32.mxu1 %vm457_vm3, %v3265_v61  ;;  %v313_v62 = vpop.permute.xlu0 %312  ;;  %v316_v63 = vpop.permute.xlu1 %315  ;;  %vm498_vm2 = vcmp.eq.s32.totalorder %v3524_v55, %v3904_v57  ;;  %vm481_vm3 = vcmp.eq.s32.totalorder %v3811_v46, %v3844_v49 }
  0xed   : > { %2591 = vmatmul.mubr.msk.f32.gmra.mrb[40].mxu0 %vm485_vm4, %v3265_v61  ;;  %2890 = vmatmul.mubr.msk.f32.gmra.mrb[42].mxu1 %vm460_vm5, %v3265_v61  ;;  %vm497_vm4 = vcmp.eq.s32.totalorder %v3519_v52, %v3904_v57  ;;  %vm484_vm5 = vcmp.eq.s32.totalorder %v3811_v46, %v3850_v50 }
  0xee   : > { %2592 = vmatprep.mubr.msk.f32.mxu0 %vm489_vm6, %v3265_v61  ;;  %2892 = vmatprep.mubr.msk.f32.mxu1 %vm463_vm7, %v3265_v61  ;;  %v319_v0 = vpop.permute.xlu0 %318  ;;  %v322_v1 = vpop.permute.xlu1 %321  ;;  %vm501_vm6 = vcmp.eq.s32.totalorder %v3524_v55, %v310_v60  ;;  %vm487_vm7 = vcmp.eq.s32.totalorder %v3811_v46, %v3860_v51 }
  0xf1   : > { %2593 = vmatmul.mubr.msk.f32.gmra.mrb[42].mxu0 %vm488_vm8, %v3265_v61  ;;  %2893 = vmatmul.mubr.msk.f32.gmra.mrb[44].mxu1 %vm466_vm9, %v3265_v61  ;;  %vm500_vm8 = vcmp.eq.s32.totalorder %v3519_v52, %v310_v60  ;;  %vm490_vm9 = vcmp.eq.s32.totalorder %v3811_v46, %v3874_v53 }
  0xf2   : > { %2594 = vmatprep.mubr.msk.f32.mxu0 %vm492_vm10, %v3265_v61  ;;  %2895 = vmatprep.mubr.msk.f32.mxu1 %vm469_vm11, %v3265_v61  ;;  %v325_v2 = vpop.permute.xlu0 %324  ;;  %v328_v3 = vpop.permute.xlu1 %327  ;;  %vm504_vm10 = vcmp.eq.s32.totalorder %v3524_v55, %v313_v62  ;;  %vm493_vm11 = vcmp.eq.s32.totalorder %v3811_v46, %v3886_v54 }
  0xf5   : > { %2595 = vmatmul.mubr.msk.f32.gmra.mrb[44].mxu0 %vm491_vm12, %v3265_v61  ;;  %2896 = vmatmul.mubr.msk.f32.gmra.mrb[46].mxu1 %vm472_vm13, %v3265_v61  ;;  %vm503_vm12 = vcmp.eq.s32.totalorder %v3519_v52, %v313_v62  ;;  %vm496_vm13 = vcmp.eq.s32.totalorder %v3811_v46, %v3894_v56 }
  0xf6   : > { %2596 = vmatprep.mubr.msk.f32.mxu0 %vm495_vm14, %v3265_v61  ;;  %2898 = vmatprep.mubr.msk.f32.mxu1 %vm475_vm15, %v3265_v61  ;;  %v331_v4 = vpop.permute.xlu0 %330  ;;  %vm507_vm14 = vcmp.eq.s32.totalorder %v3524_v55, %v316_v63  ;;  %vm499_vm15 = vcmp.eq.s32.totalorder %v3811_v46, %v3904_v57  ;;  %v334_v5 = vpop.permute.xlu1 %333 }
  0xf9   : > { %2597 = vmatmul.mubr.msk.f32.gmra.mrb[46].mxu0 %vm494_vm0, %v3265_v61  ;;  %2899 = vmatmul.mubr.msk.f32.gmra.mrb[48].mxu1 %vm478_vm1, %v3265_v61  ;;  %vm506_vm0 = vcmp.eq.s32.totalorder %v3519_v52, %v316_v63  ;;  %vm502_vm1 = vcmp.eq.s32.totalorder %v3811_v46, %v310_v60 }
  0xfa   : > { %2598 = vmatprep.mubr.msk.f32.mxu0 %vm498_vm2, %v3265_v61  ;;  %2901 = vmatprep.mubr.msk.f32.mxu1 %vm481_vm3, %v3265_v61  ;;  %vm510_vm2 = vcmp.eq.s32.totalorder %v3524_v55, %v319_v0  ;;  %vm505_vm3 = vcmp.eq.s32.totalorder %v3811_v46, %v313_v62  ;;  %v3991_v8 = vpop.permute.xlu0 %336  ;;  %v3997_v9 = vpop.permute.xlu1 %339 }
  0xfd   : > { %2599 = vmatmul.mubr.msk.f32.gmra.mrb[48].mxu0 %vm497_vm4, %v3265_v61  ;;  %2902 = vmatmul.mubr.msk.f32.gmra.mrb[50].mxu1 %vm484_vm5, %v3265_v61  ;;  %vm509_vm4 = vcmp.eq.s32.totalorder %v3519_v52, %v319_v0  ;;  %vm508_vm5 = vcmp.eq.s32.totalorder %v3811_v46, %v316_v63 }
  0xfe   : > { %2600 = vmatprep.mubr.msk.f32.mxu0 %vm501_vm6, %v3265_v61  ;;  %2904 = vmatprep.mubr.msk.f32.mxu1 %vm487_vm7, %v3265_v61  ;;  %vm513_vm6 = vcmp.eq.s32.totalorder %v3524_v55, %v322_v1  ;;  %vm511_vm7 = vcmp.eq.s32.totalorder %v3811_v46, %v319_v0  ;;  %v4005_v10 = vpop.permute.xlu0 %342  ;;  %v4015_v11 = vpop.permute.xlu1 %345 }
 0x101   : > { %2601 = vmatmul.mubr.msk.f32.gmra.mrb[50].mxu0 %vm500_vm8, %v3265_v61  ;;  %2905 = vmatmul.mubr.msk.f32.gmra.mrb[52].mxu1 %vm490_vm9, %v3265_v61  ;;  %vm512_vm8 = vcmp.eq.s32.totalorder %v3519_v52, %v322_v1  ;;  %vm514_vm9 = vcmp.eq.s32.totalorder %v3811_v46, %v322_v1 }
 0x102   : > { %2602 = vmatprep.mubr.msk.f32.mxu0 %vm504_vm10, %v3265_v61  ;;  %2907 = vmatprep.mubr.msk.f32.mxu1 %vm493_vm11, %v3265_v61  ;;  %vm516_vm10 = vcmp.eq.s32.totalorder %v3524_v55, %v325_v2  ;;  %vm517_vm11 = vcmp.eq.s32.totalorder %v3811_v46, %v325_v2  ;;  %v4023_v13 = vpop.permute.xlu0 %348  ;;  %v4029_v14 = vpop.permute.xlu1 %351 }
 0x105   : > { %2603 = vmatmul.mubr.msk.f32.gmra.mrb[52].mxu0 %vm503_vm12, %v3265_v61  ;;  %2908 = vmatmul.mubr.msk.f32.gmra.mrb[54].mxu1 %vm496_vm13, %v3265_v61  ;;  %vm515_vm12 = vcmp.eq.s32.totalorder %v3519_v52, %v325_v2  ;;  %vm520_vm13 = vcmp.eq.s32.totalorder %v3811_v46, %v328_v3 }
 0x106   : > { %2604 = vmatprep.mubr.msk.f32.mxu0 %vm507_vm14, %v3265_v61  ;;  %2910 = vmatprep.mubr.msk.f32.mxu1 %vm499_vm15, %v3265_v61  ;;  %vm519_vm14 = vcmp.eq.s32.totalorder %v3524_v55, %v328_v3  ;;  %vm523_vm15 = vcmp.eq.s32.totalorder %v3811_v46, %v331_v4  ;;  %v4038_v15 = vpop.permute.xlu0 %354  ;;  %v4050_v16 = vpop.permute.xlu1 %357 }
 0x109   : > { %2605 = vmatmul.mubr.msk.f32.gmra.mrb[54].mxu0 %vm506_vm0, %v3265_v61  ;;  %2911 = vmatmul.mubr.msk.f32.gmra.mrb[56].mxu1 %vm502_vm1, %v3265_v61  ;;  %vm518_vm0 = vcmp.eq.s32.totalorder %v3519_v52, %v328_v3  ;;  %vm526_vm1 = vcmp.eq.s32.totalorder %v3811_v46, %v334_v5 }
 0x10a   : > { %2606 = vmatprep.mubr.msk.f32.mxu0 %vm510_vm2, %v3265_v61  ;;  %2913 = vmatprep.mubr.msk.f32.mxu1 %vm505_vm3, %v3265_v61  ;;  %vm522_vm2 = vcmp.eq.s32.totalorder %v3524_v55, %v331_v4  ;;  %vm529_vm3 = vcmp.eq.s32.totalorder %v3811_v46, %v3991_v8  ;;  %v4061_v18 = vpop.permute.xlu0 %360  ;;  %v4069_v19 = vpop.permute.xlu1 %363 }
 0x10d   : > { %2607 = vmatmul.mubr.msk.f32.gmra.mrb[56].mxu0 %vm509_vm4, %v3265_v61  ;;  %2914 = vmatmul.mubr.msk.f32.gmra.mrb[58].mxu1 %vm508_vm5, %v3265_v61  ;;  %vm521_vm4 = vcmp.eq.s32.totalorder %v3519_v52, %v331_v4  ;;  %vm532_vm5 = vcmp.eq.s32.totalorder %v3811_v46, %v3997_v9 }
 0x10e   : > { %2608 = vmatprep.mubr.msk.f32.mxu0 %vm513_vm6, %v3265_v61  ;;  %2916 = vmatprep.mubr.msk.f32.mxu1 %vm511_vm7, %v3265_v61  ;;  %vm525_vm6 = vcmp.eq.s32.totalorder %v3524_v55, %v334_v5  ;;  %vm535_vm7 = vcmp.eq.s32.totalorder %v3811_v46, %v4005_v10  ;;  %v4079_v20 = vpop.permute.xlu0 %366  ;;  %v4093_v21 = vpop.permute.xlu1 %369 }
 0x111   : > { %2609 = vmatmul.mubr.msk.f32.gmra.mrb[58].mxu0 %vm512_vm8, %v3265_v61  ;;  %2917 = vmatmul.mubr.msk.f32.gmra.mrb[60].mxu1 %vm514_vm9, %v3265_v61  ;;  %vm524_vm8 = vcmp.eq.s32.totalorder %v3519_v52, %v334_v5  ;;  %vm538_vm9 = vcmp.eq.s32.totalorder %v3811_v46, %v4015_v11 }
 0x112   : > { %2610 = vmatprep.mubr.msk.f32.mxu0 %vm516_vm10, %v3265_v61  ;;  %2919 = vmatprep.mubr.msk.f32.mxu1 %vm517_vm11, %v3265_v61  ;;  %vm528_vm10 = vcmp.eq.s32.totalorder %v3524_v55, %v3991_v8  ;;  %vm541_vm11 = vcmp.eq.s32.totalorder %v3811_v46, %v4023_v13  ;;  %v4105_v6 = vpop.permute.xlu0 %372  ;;  %v4113_v23 = vpop.permute.xlu1 %375 }
 0x115   : > { %2611 = vmatmul.mubr.msk.f32.gmra.mrb[60].mxu0 %vm515_vm12, %v3265_v61  ;;  %2920 = vmatmul.mubr.msk.f32.gmra.mrb[62].mxu1 %vm520_vm13, %v3265_v61  ;;  %vm527_vm12 = vcmp.eq.s32.totalorder %v3519_v52, %v3991_v8  ;;  %vm544_vm13 = vcmp.eq.s32.totalorder %v3811_v46, %v4029_v14 }
 0x116   : > { %2612 = vmatprep.mubr.msk.f32.mxu0 %vm519_vm14, %v3265_v61  ;;  %2922 = vmatprep.mubr.msk.f32.mxu1 %vm523_vm15, %v3265_v61  ;;  %vm531_vm14 = vcmp.eq.s32.totalorder %v3524_v55, %v3997_v9  ;;  %vm547_vm15 = vcmp.eq.s32.totalorder %v3811_v46, %v4038_v15 }
 0x119   : > { %2613 = vmatmul.mubr.msk.f32.gmra.mrb[62].mxu0 %vm518_vm0, %v3265_v61  ;;  %2923 = vmatmul.mubr.msk.f32.gmra.mrb[64].mxu1 %vm526_vm1, %v3265_v61  ;;  %vm530_vm0 = vcmp.eq.s32.totalorder %v3519_v52, %v3997_v9  ;;  %vm550_vm1 = vcmp.eq.s32.totalorder %v3811_v46, %v4050_v16 }
 0x11a   : > { %2614 = vmatprep.mubr.msk.f32.mxu0 %vm522_vm2, %v3265_v61  ;;  %2925 = vmatprep.mubr.msk.f32.mxu1 %vm529_vm3, %v3265_v61  ;;  %vm534_vm2 = vcmp.eq.s32.totalorder %v3524_v55, %v4005_v10  ;;  %vm553_vm3 = vcmp.eq.s32.totalorder %v3811_v46, %v4061_v18 }
 0x11d   : > { %2615 = vmatmul.mubr.msk.f32.gmra.mrb[64].mxu0 %vm521_vm4, %v3265_v61  ;;  %2926 = vmatmul.mubr.msk.f32.gmra.mrb[66].mxu1 %vm532_vm5, %v3265_v61  ;;  %vm533_vm4 = vcmp.eq.s32.totalorder %v3519_v52, %v4005_v10  ;;  %vm556_vm5 = vcmp.eq.s32.totalorder %v3811_v46, %v4069_v19 }
 0x11e   : > { %2616 = vmatprep.mubr.msk.f32.mxu0 %vm525_vm6, %v3265_v61  ;;  %2928 = vmatprep.mubr.msk.f32.mxu1 %vm535_vm7, %v3265_v61  ;;  %vm537_vm6 = vcmp.eq.s32.totalorder %v3524_v55, %v4015_v11  ;;  %vm559_vm7 = vcmp.eq.s32.totalorder %v3811_v46, %v4079_v20 }
 0x121   : > { %2617 = vmatmul.mubr.msk.f32.gmra.mrb[66].mxu0 %vm524_vm8, %v3265_v61  ;;  %2929 = vmatmul.mubr.msk.f32.gmra.mrb[68].mxu1 %vm538_vm9, %v3265_v61  ;;  %vm536_vm8 = vcmp.eq.s32.totalorder %v3519_v52, %v4015_v11  ;;  %vm562_vm9 = vcmp.eq.s32.totalorder %v3811_v46, %v4093_v21 }
 0x122   : > { %2618 = vmatprep.mubr.msk.f32.mxu0 %vm528_vm10, %v3265_v61  ;;  %2931 = vmatprep.mubr.msk.f32.mxu1 %vm541_vm11, %v3265_v61  ;;  %vm565_vm10 = vcmp.eq.s32.totalorder %v3811_v46, %v4105_v6  ;;  %vm540_vm11 = vcmp.eq.s32.totalorder %v3524_v55, %v4023_v13 }
 0x125   : > { %2619 = vmatmul.mubr.msk.f32.gmra.mrb[68].mxu0 %vm527_vm12, %v3265_v61  ;;  %2932 = vmatmul.mubr.msk.f32.gmra.mrb[70].mxu1 %vm544_vm13, %v3265_v61  ;;  %vm568_vm12 = vcmp.eq.s32.totalorder %v3811_v46, %v4113_v23  ;;  %vm539_vm13 = vcmp.eq.s32.totalorder %v3519_v52, %v4023_v13 }
 0x126   : > { %2620 = vmatprep.mubr.msk.f32.mxu0 %vm531_vm14, %v3265_v61  ;;  %2934 = vmatprep.mubr.msk.f32.mxu1 %vm547_vm15, %v3265_v61  ;;  %vm543_vm14 = vcmp.eq.s32.totalorder %v3524_v55, %v4029_v14  ;;  %vm571_vm15 = vcmp.eq.s32.totalorder %v3811_v46, %v3534_v59 }
 0x129   : > { %2621 = vmatmul.mubr.msk.f32.gmra.mrb[70].mxu0 %vm530_vm0, %v3265_v61  ;;  %2935 = vmatmul.mubr.msk.f32.gmra.mrb[72].mxu1 %vm550_vm1, %v3265_v61  ;;  %vm542_vm0 = vcmp.eq.s32.totalorder %v3519_v52, %v4029_v14  ;;  %vm574_vm1 = vcmp.eq.s32.totalorder %v3811_v46, %v3532_v58 }
 0x12a   : > { %2622 = vmatprep.mubr.msk.f32.mxu0 %vm534_vm2, %v3265_v61  ;;  %2937 = vmatprep.mubr.msk.f32.mxu1 %vm553_vm3, %v3265_v61  ;;  %vm546_vm2 = vcmp.eq.s32.totalorder %v3524_v55, %v4038_v15  ;;  %vm577_vm3 = vcmp.eq.s32.totalorder %v3811_v46, %v3576_v7 }
 0x12d   : > { %2623 = vmatmul.mubr.msk.f32.gmra.mrb[72].mxu0 %vm533_vm4, %v3265_v61  ;;  %2938 = vmatmul.mubr.msk.f32.gmra.mrb[74].mxu1 %vm556_vm5, %v3265_v61  ;;  %vm545_vm4 = vcmp.eq.s32.totalorder %v3519_v52, %v4038_v15  ;;  %vm580_vm5 = vcmp.eq.s32.totalorder %v3811_v46, %v3598_v12 }
 0x12e   : > { %2624 = vmatprep.mubr.msk.f32.mxu0 %vm537_vm6, %v3265_v61  ;;  %2940 = vmatprep.mubr.msk.f32.mxu1 %vm559_vm7, %v3265_v61  ;;  %vm549_vm6 = vcmp.eq.s32.totalorder %v3524_v55, %v4050_v16  ;;  %vm583_vm7 = vcmp.eq.s32.totalorder %v3811_v46, %v3620_v17 }
 0x131   : > { %2625 = vmatmul.mubr.msk.f32.gmra.mrb[74].mxu0 %vm536_vm8, %v3265_v61  ;;  %2941 = vmatmul.mubr.msk.f32.gmra.mrb[76].mxu1 %vm562_vm9, %v3265_v61  ;;  %vm548_vm8 = vcmp.eq.s32.totalorder %v3519_v52, %v4050_v16  ;;  %vm586_vm9 = vcmp.eq.s32.totalorder %v3811_v46, %v3642_v22 }
 0x132   : > { %2626 = vmatprep.mubr.msk.f32.mxu0 %vm540_vm11, %v3265_v61  ;;  %2943 = vmatprep.mubr.msk.f32.mxu1 %vm565_vm10, %v3265_v61  ;;  %vm552_vm10 = vcmp.eq.s32.totalorder %v3524_v55, %v4061_v18  ;;  %vm589_vm11 = vcmp.eq.s32.totalorder %v3811_v46, %v3664_v26 }
 0x135   : > { %2627 = vmatmul.mubr.msk.f32.gmra.mrb[76].mxu0 %vm539_vm13, %v3265_v61  ;;  %2944 = vmatmul.mubr.msk.f32.gmra.mrb[78].mxu1 %vm568_vm12, %v3265_v61  ;;  %vm551_vm12 = vcmp.eq.s32.totalorder %v3519_v52, %v4061_v18  ;;  %vm592_vm13 = vcmp.eq.s32.totalorder %v3811_v46, %v3680_v29 }
 0x136   : > { %2628 = vmatprep.mubr.msk.f32.mxu0 %vm543_vm14, %v3265_v61  ;;  %2946 = vmatprep.mubr.msk.f32.mxu1 %vm571_vm15, %v3265_v61  ;;  %vm555_vm14 = vcmp.eq.s32.totalorder %v3524_v55, %v4069_v19  ;;  %vm595_vm15 = vcmp.eq.s32.totalorder %v3811_v46, %v3696_v31 }
 0x139   : > { %2629 = vmatmul.mubr.msk.f32.gmra.mrb[78].mxu0 %vm542_vm0, %v3265_v61  ;;  %2947 = vmatmul.mubr.msk.f32.gmra.mrb[80].mxu1 %vm574_vm1, %v3265_v61  ;;  %vm554_vm0 = vcmp.eq.s32.totalorder %v3519_v52, %v4069_v19  ;;  %vm598_vm1 = vcmp.eq.s32.totalorder %v3811_v46, %v3712_v33 }
 0x13a   : > { %2630 = vmatprep.mubr.msk.f32.mxu0 %vm546_vm2, %v3265_v61  ;;  %2949 = vmatprep.mubr.msk.f32.mxu1 %vm577_vm3, %v3265_v61  ;;  %vm558_vm2 = vcmp.eq.s32.totalorder %v3524_v55, %v4079_v20  ;;  %vm601_vm3 = vcmp.eq.s32.totalorder %v3811_v46, %v3728_v35 }
 0x13d   : > { %2631 = vmatmul.mubr.msk.f32.gmra.mrb[80].mxu0 %vm545_vm4, %v3265_v61  ;;  %2950 = vmatmul.mubr.msk.f32.gmra.mrb[82].mxu1 %vm580_vm5, %v3265_v61  ;;  %vm557_vm4 = vcmp.eq.s32.totalorder %v3519_v52, %v4079_v20  ;;  %vm604_vm5 = vcmp.eq.s32.totalorder %v3811_v46, %v3744_v37 }
 0x13e   : > { %2632 = vmatprep.mubr.msk.f32.mxu0 %vm549_vm6, %v3265_v61  ;;  %2952 = vmatprep.mubr.msk.f32.mxu1 %vm583_vm7, %v3265_v61  ;;  %vm561_vm6 = vcmp.eq.s32.totalorder %v3524_v55, %v4093_v21  ;;  %vm607_vm7 = vcmp.eq.s32.totalorder %v3811_v46, %v3760_v39 }
 0x141   : > { %2633 = vmatmul.mubr.msk.f32.gmra.mrb[82].mxu0 %vm548_vm8, %v3265_v61  ;;  %2953 = vmatmul.mubr.msk.f32.gmra.mrb[84].mxu1 %vm586_vm9, %v3265_v61  ;;  %vm560_vm8 = vcmp.eq.s32.totalorder %v3519_v52, %v4093_v21  ;;  %vm610_vm9 = vcmp.eq.s32.totalorder %v3811_v46, %v3776_v41 }
 0x142   : > { %2634 = vmatprep.mubr.msk.f32.mxu0 %vm552_vm10, %v3265_v61  ;;  %2955 = vmatprep.mubr.msk.f32.mxu1 %vm589_vm11, %v3265_v61  ;;  %vm564_vm10 = vcmp.eq.s32.totalorder %v3524_v55, %v4105_v6  ;;  %vm613_vm11 = vcmp.eq.s32.totalorder %v3811_v46, %v3792_v43 }
 0x145   : > { %2635 = vmatmul.mubr.msk.f32.gmra.mrb[84].mxu0 %vm551_vm12, %v3265_v61  ;;  %2956 = vmatmul.mubr.msk.f32.gmra.mrb[86].mxu1 %vm592_vm13, %v3265_v61  ;;  %vm563_vm12 = vcmp.eq.s32.totalorder %v3519_v52, %v4105_v6  ;;  %vm616_vm13 = vcmp.eq.s32.totalorder %v3811_v46, %v3808_v45 }
 0x146   : > { %2636 = vmatprep.mubr.msk.f32.mxu0 %vm555_vm14, %v3265_v61  ;;  %2958 = vmatprep.mubr.msk.f32.mxu1 %vm595_vm15, %v3265_v61  ;;  %vm567_vm14 = vcmp.eq.s32.totalorder %v3524_v55, %v4113_v23  ;;  %vm566_vm15 = vcmp.eq.s32.totalorder %v3519_v52, %v4113_v23 }
 0x149   : > { %2637 = vmatmul.mubr.msk.f32.gmra.mrb[86].mxu0 %vm554_vm0, %v3265_v61  ;;  %2959 = vmatmul.mubr.msk.f32.gmra.mrb[88].mxu1 %vm598_vm1, %v3265_v61  ;;  %vm1819_vm0 = vcmask 261120  }
 0x14a   : > { %2638 = vmatprep.mubr.msk.f32.mxu0 %vm558_vm2, %v3265_v61  ;;  %2961 = vmatprep.mubr.msk.f32.mxu1 %vm601_vm3, %v3265_v61 }
 0x14d   : > { %2639 = vmatmul.mubr.msk.f32.gmra.mrb[88].mxu0 %vm557_vm4, %v3265_v61  ;;  %2962 = vmatmul.mubr.msk.f32.gmra.mrb[90].mxu1 %vm604_vm5, %v3265_v61 }
 0x14e   : > { %2640 = vmatprep.mubr.msk.f32.mxu0 %vm561_vm6, %v3265_v61  ;;  %2964 = vmatprep.mubr.msk.f32.mxu1 %vm607_vm7, %v3265_v61 }
 0x151   : > { %2641 = vmatmul.mubr.msk.f32.gmra.mrb[90].mxu0 %vm560_vm8, %v3265_v61  ;;  %2965 = vmatmul.mubr.msk.f32.gmra.mrb[92].mxu1 %vm610_vm9, %v3265_v61 }
 0x152   : > { %2642 = vmatprep.mubr.msk.f32.mxu0 %vm564_vm10, %v3265_v61  ;;  %2967 = vmatprep.mubr.msk.f32.mxu1 %vm613_vm11, %v3265_v61 }
 0x155   : > { %2643 = vmatmul.mubr.msk.f32.gmra.mrb[92].mxu0 %vm563_vm12, %v3265_v61  ;;  %2968 = vmatmul.mubr.msk.f32.gmra.mrb[94].mxu1 %vm616_vm13, %v3265_v61 }
 0x156   : > { %2644 = vmatprep.mubr.msk.f32.mxu0 %vm567_vm14, %v3265_v61 }
 0x159   : > { %2645 = vmatmul.mubr.msk.f32.gmra.mrb[94].mxu0 %vm566_vm15, %v3265_v61 }
 0x16c   : > { %v4231_v58 = vpop.f32.mrb[0].mxu1 }
 0x16d   : > { %v1357_v59 = vpop.f32.mrb[1].mxu1 }
 0x170   : > { %v4233_v7 = vpop.f32.mrb[0].mxu0  ;;  %v4235_v12 = vpop.f32.mrb[2].mxu1 }
 0x171   : > { %v1117_v17 = vpop.f32.mrb[1].mxu0  ;;  %v1362_v55 = vpop.f32.mrb[3].mxu1 }
 0x174   : > { %v1120_v22 = vpop.f32.mrb[2].mxu0  ;;  %v4237_v24 = vpop.f32.mrb[4].mxu1 }
 0x175   : > { %v1122_v25 = vpop.f32.mrb[3].mxu0  ;;  %v1367_v26 = vpop.f32.mrb[5].mxu1 }
 0x178   : > { %v4239_v27 = vpop.f32.mrb[4].mxu0  ;;  %v4241_v28 = vpop.f32.mrb[6].mxu1 }
 0x179   : > { %v1127_v52 = vpop.f32.mrb[5].mxu0  ;;  %v1372_v61 = vpop.f32.mrb[7].mxu1 }
 0x17c   : > { %v1130_v29 = vpop.f32.mrb[6].mxu0  ;;  %v4243_v30 = vpop.f32.mrb[8].mxu1 }
 0x17d   : > { %v1132_v31 = vpop.f32.mrb[7].mxu0  ;;  %v1377_v32 = vpop.f32.mrb[9].mxu1 }
 0x180   : > { %v4245_v33 = vpop.f32.mrb[8].mxu0  ;;  %v4247_v34 = vpop.f32.mrb[10].mxu1 }
 0x181   : > { %v1137_v35 = vpop.f32.mrb[9].mxu0  ;;  %v1382_v36 = vpop.f32.mrb[11].mxu1 }
 0x184   : > { %v1140_v37 = vpop.f32.mrb[10].mxu0  ;;  %v4249_v38 = vpop.f32.mrb[12].mxu1 }
 0x185   : > { %v1142_v39 = vpop.f32.mrb[11].mxu0  ;;  %v1387_v40 = vpop.f32.mrb[13].mxu1 }
 0x188   : > { %v4251_v41 = vpop.f32.mrb[12].mxu0  ;;  %v4253_v42 = vpop.f32.mrb[14].mxu1 }
 0x189   : > { %v1147_v43 = vpop.f32.mrb[13].mxu0  ;;  %v1392_v44 = vpop.f32.mrb[15].mxu1 }
 0x18c   : > { %v1150_v45 = vpop.f32.mrb[14].mxu0  ;;  %v4255_v46 = vpop.f32.mrb[16].mxu1 }
 0x18d   : > { %v1152_v47 = vpop.f32.mrb[15].mxu0  ;;  %v1397_v48 = vpop.f32.mrb[17].mxu1 }
 0x190   : > { %v4257_v49 = vpop.f32.mrb[16].mxu0  ;;  %v4259_v50 = vpop.f32.mrb[18].mxu1 }
 0x191   : > { %v1157_v51 = vpop.f32.mrb[17].mxu0  ;;  %v1402_v53 = vpop.f32.mrb[19].mxu1 }
 0x194   : > { %v1160_v54 = vpop.f32.mrb[18].mxu0  ;;  %v4261_v56 = vpop.f32.mrb[20].mxu1 }
 0x195   : > { %v1162_v57 = vpop.f32.mrb[19].mxu0  ;;  %v1407_v60 = vpop.f32.mrb[21].mxu1 }
 0x198   : > { %v4263_v62 = vpop.f32.mrb[20].mxu0  ;;  %v4265_v63 = vpop.f32.mrb[22].mxu1 }
 0x199   : > { %v1167_v0 = vpop.f32.mrb[21].mxu0  ;;  %v1412_v1 = vpop.f32.mrb[23].mxu1 }
 0x19c   : > { %v1170_v2 = vpop.f32.mrb[22].mxu0  ;;  %v4267_v3 = vpop.f32.mrb[24].mxu1 }
 0x19d   : > { %v1172_v4 = vpop.f32.mrb[23].mxu0  ;;  %v1417_v5 = vpop.f32.mrb[25].mxu1 }
 0x1a0   : > { %v4269_v8 = vpop.f32.mrb[24].mxu0  ;;  %v4271_v9 = vpop.f32.mrb[26].mxu1 }
 0x1a1   : > { %v1177_v10 = vpop.f32.mrb[25].mxu0  ;;  %v1422_v11 = vpop.f32.mrb[27].mxu1 }
 0x1a4   : > { %v1180_v13 = vpop.f32.mrb[26].mxu0  ;;  %v4273_v14 = vpop.f32.mrb[28].mxu1 }
 0x1a5   : > { %v1182_v15 = vpop.f32.mrb[27].mxu0  ;;  %v1427_v16 = vpop.f32.mrb[29].mxu1 }
 0x1a8   : > { %v4276_v18 = vpop.f32.mrb[28].mxu0  ;;  %v4278_v19 = vpop.f32.mrb[30].mxu1 }
 0x1a9   : > { %v1187_v20 = vpop.f32.mrb[29].mxu0  ;;  %v1432_v21 = vpop.f32.mrb[31].mxu1 }
 0x1ac   : > { %v1190_v6 = vpop.f32.mrb[30].mxu0  ;;  %v2876_v23 = vpop.f32.mrb[32].mxu1 }
 0x1ad   : > { %v1506_v59 = vadd.f32 %v2876_v23, %v1120_v22  ;;  %v1192_v17 = vpop.f32.mrb[31].mxu0  ;;  %v1500_v55 = vpop.f32.mrb[33].mxu1 }
 0x1ae   : > { %v1501_v25 = vadd.f32 %v1500_v55, %v4233_v7 }
 0x1af   : > { %1821 = vst.msk [vmem:[%s4281_s19 + $0x8] sm:$0xff] %vm1819_vm0, %v1506_v59 }
 0x1b0   : > { %1820 = vst.msk [vmem:[%s4281_s19] sm:$0xff] %vm1819_vm0, %v1501_v25  ;;  %v1195_v26 = vpop.f32.mrb[32].mxu0  ;;  %v2879_v52 = vpop.f32.mrb[34].mxu1 }
 0x1b1   : > { %v1516_v61 = vadd.f32 %v2879_v52, %v1130_v29  ;;  %v1197_v22 = vpop.f32.mrb[33].mxu0  ;;  %v1510_v31 = vpop.f32.mrb[35].mxu1 }
 0x1b2   : > { %v1511_v32 = vadd.f32 %v1510_v31, %v4239_v27 }
 0x1b3   : > { %1823 = vst.msk [vmem:[%s4281_s19 + $0x18] sm:$0xff] %vm1819_vm0, %v1516_v61 }
 0x1b4   : > { %1822 = vst.msk [vmem:[%s4281_s19 + $0x10] sm:$0xff] %vm1819_vm0, %v1511_v32  ;;  %v1200_v7 = vpop.f32.mrb[34].mxu0  ;;  %v2882_v35 = vpop.f32.mrb[36].mxu1 }
 0x1b5   : > { %v1526_v36 = vadd.f32 %v2882_v35, %v1140_v37  ;;  %v1202_v39 = vpop.f32.mrb[35].mxu0  ;;  %v1520_v40 = vpop.f32.mrb[37].mxu1 }
 0x1b6   : > { %v1521_v43 = vadd.f32 %v1520_v40, %v4245_v33 }
 0x1b7   : > { %1825 = vst.msk [vmem:[%s4281_s19 + $0x28] sm:$0xff] %vm1819_vm0, %v1526_v36 }
 0x1b8   : > { %1824 = vst.msk [vmem:[%s4281_s19 + $0x20] sm:$0xff] %vm1819_vm0, %v1521_v43  ;;  %v1205_v27 = vpop.f32.mrb[36].mxu0  ;;  %v2885_v29 = vpop.f32.mrb[38].mxu1 }
 0x1b9   : > { %v1536_v44 = vadd.f32 %v2885_v29, %v1150_v45  ;;  %v1207_v47 = vpop.f32.mrb[37].mxu0  ;;  %v1530_v48 = vpop.f32.mrb[39].mxu1 }
 0x1ba   : > { %v1531_v51 = vadd.f32 %v1530_v48, %v4251_v41 }
 0x1bb   : > { %1827 = vst.msk [vmem:[%s4281_s19 + $0x38] sm:$0xff] %vm1819_vm0, %v1536_v44 }
 0x1bc   : > { %1826 = vst.msk [vmem:[%s4281_s19 + $0x30] sm:$0xff] %vm1819_vm0, %v1531_v51  ;;  %v1210_v33 = vpop.f32.mrb[38].mxu0  ;;  %v2888_v37 = vpop.f32.mrb[40].mxu1 }
 0x1bd   : > { %v1546_v53 = vadd.f32 %v2888_v37, %v1160_v54  ;;  %v1212_v57 = vpop.f32.mrb[39].mxu0  ;;  %v1540_v60 = vpop.f32.mrb[41].mxu1 }
 0x1be   : > { %v1541_v0 = vadd.f32 %v1540_v60, %v4257_v49 }
 0x1bf   : > { %1829 = vst.msk [vmem:[%s4281_s19 + $0x48] sm:$0xff] %vm1819_vm0, %v1546_v53 }
 0x1c0   : > { %1828 = vst.msk [vmem:[%s4281_s19 + $0x40] sm:$0xff] %vm1819_vm0, %v1541_v0  ;;  %v1215_v41 = vpop.f32.mrb[40].mxu0  ;;  %v2891_v45 = vpop.f32.mrb[42].mxu1 }
 0x1c1   : > { %v1556_v1 = vadd.f32 %v2891_v45, %v1170_v2  ;;  %v1217_v4 = vpop.f32.mrb[41].mxu0  ;;  %v1550_v5 = vpop.f32.mrb[43].mxu1 }
 0x1c2   : > { %v1551_v10 = vadd.f32 %v1550_v5, %v4263_v62 }
 0x1c3   : > { %1831 = vst.msk [vmem:[%s4281_s19 + $0x58] sm:$0xff] %vm1819_vm0, %v1556_v1 }
 0x1c4   : > { %1830 = vst.msk [vmem:[%s4281_s19 + $0x50] sm:$0xff] %vm1819_vm0, %v1551_v10  ;;  %v1220_v49 = vpop.f32.mrb[42].mxu0  ;;  %v2894_v54 = vpop.f32.mrb[44].mxu1 }
 0x1c5   : > { %v1566_v11 = vadd.f32 %v2894_v54, %v1180_v13  ;;  %v1222_v15 = vpop.f32.mrb[43].mxu0  ;;  %v1560_v16 = vpop.f32.mrb[45].mxu1 }
 0x1c6   : > { %v1561_v20 = vadd.f32 %v1560_v16, %v4269_v8 }
 0x1c7   : > { %1833 = vst.msk [vmem:[%s4281_s19 + $0x68] sm:$0xff] %vm1819_vm0, %v1566_v11 }
 0x1c8   : > { %1832 = vst.msk [vmem:[%s4281_s19 + $0x60] sm:$0xff] %vm1819_vm0, %v1561_v20  ;;  %v1225_v62 = vpop.f32.mrb[44].mxu0  ;;  %v2897_v2 = vpop.f32.mrb[46].mxu1 }
 0x1c9   : > { %v1576_v21 = vadd.f32 %v2897_v2, %v1190_v6  ;;  %v1227_v23 = vpop.f32.mrb[45].mxu0  ;;  %v1570_v59 = vpop.f32.mrb[47].mxu1 }
 0x1ca   : > { %v1571_v17 = vadd.f32 %v1570_v59, %v4276_v18 }
 0x1cb   : > { %1835 = vst.msk [vmem:[%s4281_s19 + $0x78] sm:$0xff] %vm1819_vm0, %v1576_v21 }
 0x1cc   : > { %1834 = vst.msk [vmem:[%s4281_s19 + $0x70] sm:$0xff] %vm1819_vm0, %v1571_v17  ;;  %v1230_v8 = vpop.f32.mrb[46].mxu0  ;;  %v2900_v13 = vpop.f32.mrb[48].mxu1 }
 0x1cd   : > { %v1586_v55 = vadd.f32 %v2900_v13, %v1200_v7  ;;  %v1232_v25 = vpop.f32.mrb[47].mxu0  ;;  %v1580_v52 = vpop.f32.mrb[49].mxu1 }
 0x1ce   : > { %v1581_v61 = vadd.f32 %v1580_v52, %v1195_v26 }
 0x1cf   : > { %1837 = vst.msk [vmem:[%s4281_s19 + $0x88] sm:$0xff] %vm1819_vm0, %v1586_v55 }
 0x1d0   : > { %1836 = vst.msk [vmem:[%s4281_s19 + $0x80] sm:$0xff] %vm1819_vm0, %v1581_v61  ;;  %v1235_v6 = vpop.f32.mrb[48].mxu0  ;;  %v2903_v18 = vpop.f32.mrb[50].mxu1 }
 0x1d1   : > { %v1596_v22 = vadd.f32 %v2903_v18, %v1210_v33  ;;  %v1237_v31 = vpop.f32.mrb[49].mxu0  ;;  %v1590_v32 = vpop.f32.mrb[51].mxu1 }
 0x1d2   : > { %v1591_v35 = vadd.f32 %v1590_v32, %v1205_v27 }
 0x1d3   : > { %1839 = vst.msk [vmem:[%s4281_s19 + $0x98] sm:$0xff] %vm1819_vm0, %v1596_v22 }
 0x1d4   : > { %1838 = vst.msk [vmem:[%s4281_s19 + $0x90] sm:$0xff] %vm1819_vm0, %v1591_v35  ;;  %v1240_v7 = vpop.f32.mrb[50].mxu0  ;;  %v2906_v26 = vpop.f32.mrb[52].mxu1 }
 0x1d5   : > { %v1606_v36 = vadd.f32 %v2906_v26, %v1220_v49  ;;  %v1242_v39 = vpop.f32.mrb[51].mxu0  ;;  %v1600_v40 = vpop.f32.mrb[53].mxu1 }
 0x1d6   : > { %v1601_v43 = vadd.f32 %v1600_v40, %v1215_v41 }
 0x1d7   : > { %1841 = vst.msk [vmem:[%s4281_s19 + $0xa8] sm:$0xff] %vm1819_vm0, %v1606_v36 }
 0x1d8   : > { %1840 = vst.msk [vmem:[%s4281_s19 + $0xa0] sm:$0xff] %vm1819_vm0, %v1601_v43  ;;  %v1245_v29 = vpop.f32.mrb[52].mxu0  ;;  %v2909_v27 = vpop.f32.mrb[54].mxu1 }
 0x1d9   : > { %v1616_v44 = vadd.f32 %v2909_v27, %v1230_v8  ;;  %v1247_v47 = vpop.f32.mrb[53].mxu0  ;;  %v1610_v48 = vpop.f32.mrb[55].mxu1 }
 0x1da   : > { %v1611_v51 = vadd.f32 %v1610_v48, %v1225_v62 }
 0x1db   : > { %1843 = vst.msk [vmem:[%s4281_s19 + $0xb8] sm:$0xff] %vm1819_vm0, %v1616_v44 }
 0x1dc   : > { %1842 = vst.msk [vmem:[%s4281_s19 + $0xb0] sm:$0xff] %vm1819_vm0, %v1611_v51  ;;  %v1250_v33 = vpop.f32.mrb[54].mxu0  ;;  %v2912_v37 = vpop.f32.mrb[56].mxu1 }
 0x1dd   : > { %v1626_v53 = vadd.f32 %v2912_v37, %v1240_v7  ;;  %v1252_v57 = vpop.f32.mrb[55].mxu0  ;;  %v1620_v60 = vpop.f32.mrb[57].mxu1 }
 0x1de   : > { %v1621_v0 = vadd.f32 %v1620_v60, %v1235_v6 }
 0x1df   : > { %1845 = vst.msk [vmem:[%s4281_s19 + $0xc8] sm:$0xff] %vm1819_vm0, %v1626_v53 }
 0x1e0   : > { %1844 = vst.msk [vmem:[%s4281_s19 + $0xc0] sm:$0xff] %vm1819_vm0, %v1621_v0  ;;  %v1255_v41 = vpop.f32.mrb[56].mxu0  ;;  %v2915_v45 = vpop.f32.mrb[58].mxu1 }
 0x1e1   : > { %v1636_v1 = vadd.f32 %v2915_v45, %v1250_v33  ;;  %v1257_v4 = vpop.f32.mrb[57].mxu0  ;;  %v1630_v5 = vpop.f32.mrb[59].mxu1 }
 0x1e2   : > { %v1631_v10 = vadd.f32 %v1630_v5, %v1245_v29 }
 0x1e3   : > { %1847 = vst.msk [vmem:[%s4281_s19 + $0xd8] sm:$0xff] %vm1819_vm0, %v1636_v1 }
 0x1e4   : > { %1846 = vst.msk [vmem:[%s4281_s19 + $0xd0] sm:$0xff] %vm1819_vm0, %v1631_v10  ;;  %v1260_v49 = vpop.f32.mrb[58].mxu0  ;;  %v2918_v54 = vpop.f32.mrb[60].mxu1 }
 0x1e5   : > { %v1646_v11 = vadd.f32 %v2918_v54, %v1260_v49  ;;  %v1262_v15 = vpop.f32.mrb[59].mxu0  ;;  %v1640_v16 = vpop.f32.mrb[61].mxu1 }
 0x1e6   : > { %v1641_v20 = vadd.f32 %v1640_v16, %v1255_v41 }
 0x1e7   : > { %1849 = vst.msk [vmem:[%s4281_s19 + $0xe8] sm:$0xff] %vm1819_vm0, %v1646_v11 }
 0x1e8   : > { %1848 = vst.msk [vmem:[%s4281_s19 + $0xe0] sm:$0xff] %vm1819_vm0, %v1641_v20  ;;  %v1265_v62 = vpop.f32.mrb[60].mxu0  ;;  %v2921_v2 = vpop.f32.mrb[62].mxu1 }
 0x1e9   : > { %v1267_v21 = vpop.f32.mrb[61].mxu0  ;;  %v1650_v23 = vpop.f32.mrb[63].mxu1 }
 0x1ea   : > { %v1651_v59 = vadd.f32 %v1650_v23, %v1265_v62 }
 0x1ec   : > { %1850 = vst.msk [vmem:[%s4281_s19 + $0xf0] sm:$0xff] %vm1819_vm0, %v1651_v59  ;;  %v1270_v17 = vpop.f32.mrb[62].mxu0  ;;  %v2924_v8 = vpop.f32.mrb[64].mxu1 }
 0x1ed   : > { %v1656_v13 = vadd.f32 %v2921_v2, %v1270_v17  ;;  %v1272_v55 = vpop.f32.mrb[63].mxu0  ;;  %v1660_v25 = vpop.f32.mrb[65].mxu1 }
 0x1ef   : > { %1851 = vst.msk [vmem:[%s4281_s19 + $0xf8] sm:$0xff] %vm1819_vm0, %v1656_v13 }
 0x1f0   : > { %v1275_v52 = vpop.f32.mrb[64].mxu0  ;;  %v2927_v61 = vpop.f32.mrb[66].mxu1 }
 0x1f1   : > { %v1661_v6 = vadd.f32 %v1660_v25, %v1275_v52  ;;  %v1277_v18 = vpop.f32.mrb[65].mxu0  ;;  %v1670_v22 = vpop.f32.mrb[67].mxu1 }
 0x1f3   : > { %1852 = vst.msk [vmem:[%s4281_s19 + $0x100] sm:$0xff] %vm1819_vm0, %v1661_v6 }
 0x1f4   : > { %v1280_v31 = vpop.f32.mrb[66].mxu0  ;;  %v2930_v32 = vpop.f32.mrb[68].mxu1 }
 0x1f5   : > { %v1666_v35 = vadd.f32 %v2924_v8, %v1280_v31  ;;  %v1282_v7 = vpop.f32.mrb[67].mxu0  ;;  %v1680_v26 = vpop.f32.mrb[69].mxu1 }
 0x1f7   : > { %1853 = vst.msk [vmem:[%s4281_s19 + $0x108] sm:$0xff] %vm1819_vm0, %v1666_v35 }
 0x1f8   : > { %v1285_v36 = vpop.f32.mrb[68].mxu0  ;;  %v2933_v39 = vpop.f32.mrb[70].mxu1 }
 0x1f9   : > { %v1671_v40 = vadd.f32 %v1670_v22, %v1285_v36  ;;  %v1287_v43 = vpop.f32.mrb[69].mxu0  ;;  %v1690_v29 = vpop.f32.mrb[71].mxu1 }
 0x1fb   : > { %1854 = vst.msk [vmem:[%s4281_s19 + $0x110] sm:$0xff] %vm1819_vm0, %v1671_v40 }
 0x1fc   : > { %v1290_v27 = vpop.f32.mrb[70].mxu0  ;;  %v2936_v44 = vpop.f32.mrb[72].mxu1 }
 0x1fd   : > { %v1676_v47 = vadd.f32 %v2927_v61, %v1290_v27  ;;  %v1292_v48 = vpop.f32.mrb[71].mxu0  ;;  %v1700_v51 = vpop.f32.mrb[73].mxu1 }
 0x1ff   : > { %1855 = vst.msk [vmem:[%s4281_s19 + $0x118] sm:$0xff] %vm1819_vm0, %v1676_v47 }
 0x200   : > { %v1295_v33 = vpop.f32.mrb[72].mxu0  ;;  %v2939_v37 = vpop.f32.mrb[74].mxu1 }
 0x201   : > { %v1681_v53 = vadd.f32 %v1680_v26, %v1295_v33  ;;  %v1297_v57 = vpop.f32.mrb[73].mxu0  ;;  %v1710_v60 = vpop.f32.mrb[75].mxu1 }
 0x203   : > { %1856 = vst.msk [vmem:[%s4281_s19 + $0x120] sm:$0xff] %vm1819_vm0, %v1681_v53 }
 0x204   : > { %v1300_v0 = vpop.f32.mrb[74].mxu0  ;;  %v4364_v41 = vpop.f32.mrb[76].mxu1 }
 0x205   : > { %v1686_v45 = vadd.f32 %v2930_v32, %v1300_v0  ;;  %v1302_v1 = vpop.f32.mrb[75].mxu0  ;;  %v1720_v4 = vpop.f32.mrb[77].mxu1 }
 0x207   : > { %1857 = vst.msk [vmem:[%s4281_s19 + $0x128] sm:$0xff] %vm1819_vm0, %v1686_v45 }
 0x208   : > { %v1305_v5 = vpop.f32.mrb[76].mxu0  ;;  %v4368_v10 = vpop.f32.mrb[78].mxu1 }
 0x209   : > { %v1691_v49 = vadd.f32 %v1690_v29, %v1305_v5  ;;  %v1307_v54 = vpop.f32.mrb[77].mxu0  ;;  %v4370_v11 = vpop.f32.mrb[79].mxu1 }
 0x20b   : > { %1858 = vst.msk [vmem:[%s4281_s19 + $0x130] sm:$0xff] %vm1819_vm0, %v1691_v49 }
 0x20c   : > { %v1310_v15 = vpop.f32.mrb[78].mxu0  ;;  %v2948_v16 = vpop.f32.mrb[80].mxu1 }
 0x20d   : > { %v1696_v20 = vadd.f32 %v2933_v39, %v1310_v15  ;;  %v1746_v62 = vadd.f32 %v2948_v16, %v4235_v12  ;;  %v1312_v2 = vpop.f32.mrb[79].mxu0  ;;  %v1740_v21 = vpop.f32.mrb[81].mxu1 }
 0x20e   : > { %v1741_v23 = vadd.f32 %v1740_v21, %v4231_v58 }
 0x20f   : > { %1859 = vst.msk [vmem:[%s4281_s19 + $0x138] sm:$0xff] %vm1819_vm0, %v1696_v20  ;;  %1869 = vst.msk [vmem:[%s4281_s19 + $0x188] sm:$0xff] %vm1819_vm0, %v1746_v62 }
 0x210   : > { %1868 = vst.msk [vmem:[%s4281_s19 + $0x180] sm:$0xff] %vm1819_vm0, %v1741_v23  ;;  %v1315_v59 = vpop.f32.mrb[80].mxu0  ;;  %v2951_v17 = vpop.f32.mrb[82].mxu1 }
 0x211   : > { %v1701_v8 = vadd.f32 %v1700_v51, %v1315_v59  ;;  %v1756_v13 = vadd.f32 %v2951_v17, %v4241_v28  ;;  %v1317_v12 = vpop.f32.mrb[81].mxu0  ;;  %v1750_v55 = vpop.f32.mrb[83].mxu1 }
 0x212   : > { %v1751_v25 = vadd.f32 %v1750_v55, %v4237_v24 }
 0x213   : > { %1860 = vst.msk [vmem:[%s4281_s19 + $0x140] sm:$0xff] %vm1819_vm0, %v1701_v8  ;;  %1871 = vst.msk [vmem:[%s4281_s19 + $0x198] sm:$0xff] %vm1819_vm0, %v1756_v13 }
 0x214   : > { %1870 = vst.msk [vmem:[%s4281_s19 + $0x190] sm:$0xff] %vm1819_vm0, %v1751_v25  ;;  %v1320_v58 = vpop.f32.mrb[82].mxu0  ;;  %v2954_v52 = vpop.f32.mrb[84].mxu1 }
 0x215   : > { %v1706_v61 = vadd.f32 %v2936_v44, %v1320_v58  ;;  %v1766_v6 = vadd.f32 %v2954_v52, %v4247_v34  ;;  %v1322_v28 = vpop.f32.mrb[83].mxu0  ;;  %v1760_v18 = vpop.f32.mrb[85].mxu1 }
 0x216   : > { %v1761_v22 = vadd.f32 %v1760_v18, %v4243_v30 }
 0x217   : > { %1861 = vst.msk [vmem:[%s4281_s19 + $0x148] sm:$0xff] %vm1819_vm0, %v1706_v61  ;;  %1873 = vst.msk [vmem:[%s4281_s19 + $0x1a8] sm:$0xff] %vm1819_vm0, %v1766_v6 }
 0x218   : > { %1872 = vst.msk [vmem:[%s4281_s19 + $0x1a0] sm:$0xff] %vm1819_vm0, %v1761_v22  ;;  %v1325_v24 = vpop.f32.mrb[84].mxu0  ;;  %v2957_v31 = vpop.f32.mrb[86].mxu1 }
 0x219   : > { %v1711_v32 = vadd.f32 %v1710_v60, %v1325_v24  ;;  %v1776_v35 = vadd.f32 %v2957_v31, %v4253_v42  ;;  %v1327_v34 = vpop.f32.mrb[85].mxu0  ;;  %v1770_v7 = vpop.f32.mrb[87].mxu1 }
 0x21a   : > { %v1771_v26 = vadd.f32 %v1770_v7, %v4249_v38 }
 0x21b   : > { %1862 = vst.msk [vmem:[%s4281_s19 + $0x150] sm:$0xff] %vm1819_vm0, %v1711_v32  ;;  %1875 = vst.msk [vmem:[%s4281_s19 + $0x1b8] sm:$0xff] %vm1819_vm0, %v1776_v35 }
 0x21c   : > { %1874 = vst.msk [vmem:[%s4281_s19 + $0x1b0] sm:$0xff] %vm1819_vm0, %v1771_v26  ;;  %v1330_v30 = vpop.f32.mrb[86].mxu0  ;;  %v2960_v36 = vpop.f32.mrb[88].mxu1 }
 0x21d   : > { %v1716_v39 = vadd.f32 %v2939_v37, %v1330_v30  ;;  %v1786_v40 = vadd.f32 %v2960_v36, %v4259_v50  ;;  %v1332_v42 = vpop.f32.mrb[87].mxu0  ;;  %v1780_v43 = vpop.f32.mrb[89].mxu1 }
 0x21e   : > { %v1781_v29 = vadd.f32 %v1780_v43, %v4255_v46 }
 0x21f   : > { %1863 = vst.msk [vmem:[%s4281_s19 + $0x158] sm:$0xff] %vm1819_vm0, %v1716_v39  ;;  %1877 = vst.msk [vmem:[%s4281_s19 + $0x1c8] sm:$0xff] %vm1819_vm0, %v1786_v40 }
 0x220   : > { %1876 = vst.msk [vmem:[%s4281_s19 + $0x1c0] sm:$0xff] %vm1819_vm0, %v1781_v29  ;;  %v1335_v38 = vpop.f32.mrb[88].mxu0  ;;  %v2963_v27 = vpop.f32.mrb[90].mxu1 }
 0x221   : > { %v1721_v44 = vadd.f32 %v1720_v4, %v1335_v38  ;;  %v1796_v47 = vadd.f32 %v2963_v27, %v4265_v63  ;;  %v1337_v50 = vpop.f32.mrb[89].mxu0  ;;  %v1790_v48 = vpop.f32.mrb[91].mxu1 }
 0x222   : > { %v1791_v51 = vadd.f32 %v1790_v48, %v4261_v56 }
 0x223   : > { %1864 = vst.msk [vmem:[%s4281_s19 + $0x160] sm:$0xff] %vm1819_vm0, %v1721_v44  ;;  %1879 = vst.msk [vmem:[%s4281_s19 + $0x1d8] sm:$0xff] %vm1819_vm0, %v1796_v47 }
 0x224   : > { %1878 = vst.msk [vmem:[%s4281_s19 + $0x1d0] sm:$0xff] %vm1819_vm0, %v1791_v51  ;;  %v1340_v46 = vpop.f32.mrb[90].mxu0  ;;  %v2966_v33 = vpop.f32.mrb[92].mxu1 }
 0x225   : > { %v1726_v37 = vadd.f32 %v4364_v41, %v1340_v46  ;;  %v1806_v53 = vadd.f32 %v2966_v33, %v4271_v9  ;;  %v1342_v63 = vpop.f32.mrb[91].mxu0  ;;  %v1800_v57 = vpop.f32.mrb[93].mxu1 }
 0x226   : > { %v1801_v60 = vadd.f32 %v1800_v57, %v4267_v3 }
 0x227   : > { %1865 = vst.msk [vmem:[%s4281_s19 + $0x168] sm:$0xff] %vm1819_vm0, %v1726_v37  ;;  %1881 = vst.msk [vmem:[%s4281_s19 + $0x1e8] sm:$0xff] %vm1819_vm0, %v1806_v53 }
 0x228   : > { %1880 = vst.msk [vmem:[%s4281_s19 + $0x1e0] sm:$0xff] %vm1819_vm0, %v1801_v60  ;;  %v1345_v56 = vpop.f32.mrb[92].mxu0  ;;  %v2969_v0 = vpop.f32.mrb[94].mxu1 }
 0x229   : > { %v1731_v45 = vadd.f32 %v4370_v11, %v1345_v56  ;;  %v1816_v41 = vadd.f32 %v2969_v0, %v4278_v19  ;;  %v1347_v1 = vpop.f32.mrb[93].mxu0  ;;  %v1810_v9 = vpop.f32.mrb[95].mxu1  ;;  %1890 = sbr.rel (!%p3306_p4) target bundleno = 632 (0x278), region = 32 }
 0x22a   : > { %v1811_v4 = vadd.f32 %v1810_v9, %v4273_v14 }
 0x22b   : > { %1866 = vst.msk [vmem:[%s4281_s19 + $0x170] sm:$0xff] %vm1819_vm0, %v1731_v45  ;;  %1883 = vst.msk [vmem:[%s4281_s19 + $0x1f8] sm:$0xff] %vm1819_vm0, %v1816_v41 }
 0x22c   : > { %1882 = vst.msk [vmem:[%s4281_s19 + $0x1f0] sm:$0xff] %vm1819_vm0, %v1811_v4  ;;  %v1350_v3 = vpop.f32.mrb[94].mxu0 }
 0x22d   : > { %v1736_v5 = vadd.f32 %v4368_v10, %v1350_v3  ;;  %v1352_v49 = vpop.f32.mrb[95].mxu0 }
 0x22f   : > { %1867 = vst.msk [vmem:[%s4281_s19 + $0x178] sm:$0xff] %vm1819_vm0, %v1736_v5 }
 0x230   : > { %s4662_s9 = smov (!%p1893_p8, %s1892_s9), 64 }
 0x231   : > { %s2744_s24 = sshll.u32 %s4662_s9, 7 }
 0x232   : > { %p2747_p9 = scmp.eq.s32.totalorder %s2744_s24, 0 }
 0x233   : > { %s4456_s25 = sshrl.u32 (!%p2747_p9), %s4662_s9, 6 }
 0x234   : > { %1901 = sbr.rel (%p2747_p9) target bundleno = 632 (0x278), region = 36  ;;  %p2748_p10 = scmp.le.s32.totalorder (!%p2747_p9), %s4456_s25, 0 }
 0x23b   : > { %2307 = sbr.rel (%p2748_p10) target bundleno = 611 (0x263), region = 112  ;;  %s4653_s12 = smov (!%p2748_p10), %s4450_s23 }
 0x23c   : > { %s4654_s17 = smov (!%p2748_p10), %s4281_s19  ;;  %s4465_s18 = smov (!%p2748_p10), 0  }
 0x23d   : > { %s4467_s26 = smov (!%p2748_p10), 0  }
 0x242 LB: >> { %v2089_v14 = vld [vmem:[%s3237_s17] sm:$0xff]  ;;  %v2091_v19 = vld [vmem:[%s3237_s17 + $0x8] sm:$0xff]  ;;  %v2093_v10 = vld [vmem:[%s3237_s17 + $0x10] sm:$0xff]  ;;  %s2217_s27 = sadd.s32 1, %s3241_s18  ;;  %s2083_s26 = sadd.s32 1, %s3245_s26   ;;  %s3245_s26 = sphi %s4467_s26, %s2083_s26   ;;  %s3241_s18 = sphi %s4465_s18, %s4657_s18   ;;  %s3237_s17 = sphi %s4654_s17, %s4656_s17   ;;  %s3233_s12 = sphi %s4653_s12, %s4655_s12  }
 0x243   : >> { %2090 = vst [vmem:[%s3233_s12] sm:$0xff] %v2089_v14  ;;  %2092 = vst [vmem:[%s3233_s12 + $0x8] sm:$0xff] %v2091_v19  ;;  %v2095_v54 = vld [vmem:[%s3237_s17 + $0x18] sm:$0xff]  ;;  %v2097_v11 = vld [vmem:[%s3237_s17 + $0x20] sm:$0xff]  ;;  %p2218_p11 = scmp.ge.s32.totalorder %s2217_s27, %s4456_s25  ;;  %p2082_p12 = scmp.ge.s32.totalorder %s2083_s26, %s4456_s25 }
 0x244   : >> { %2094 = vst [vmem:[%s3233_s12 + $0x10] sm:$0xff] %v2093_v10  ;;  %v2099_v15 = vld [vmem:[%s3237_s17 + $0x28] sm:$0xff]  ;;  %2096 = vst [vmem:[%s3233_s12 + $0x18] sm:$0xff] %v2095_v54  ;;  %v2101_v16 = vld [vmem:[%s3237_s17 + $0x30] sm:$0xff] }
 0x245   : >> { %2098 = vst [vmem:[%s3233_s12 + $0x20] sm:$0xff] %v2097_v11  ;;  %2100 = vst [vmem:[%s3233_s12 + $0x28] sm:$0xff] %v2099_v15  ;;  %v2103_v20 = vld [vmem:[%s3237_s17 + $0x38] sm:$0xff]  ;;  %v2105_v62 = vld [vmem:[%s3237_s17 + $0x40] sm:$0xff]  ;;  %s4664_s27 = smov (%p2218_p11, %s2217_s27), 0 }
 0x246   : >> { %2102 = vst [vmem:[%s3233_s12 + $0x30] sm:$0xff] %v2101_v16  ;;  %2104 = vst [vmem:[%s3233_s12 + $0x38] sm:$0xff] %v2103_v20  ;;  %v2107_v2 = vld [vmem:[%s3237_s17 + $0x48] sm:$0xff]  ;;  %v2109_v21 = vld [vmem:[%s3237_s17 + $0x50] sm:$0xff]  ;;  %s2749_s28 = sshll.u32 %s4664_s27, 9  ;;  %s4657_s18 = smov %s4664_s27 }
 0x247   : >> { %2106 = vst [vmem:[%s3233_s12 + $0x40] sm:$0xff] %v2105_v62  ;;  %v2111_v23 = vld [vmem:[%s3237_s17 + $0x58] sm:$0xff]  ;;  %2108 = vst [vmem:[%s3233_s12 + $0x48] sm:$0xff] %v2107_v2  ;;  %v2113_v59 = vld [vmem:[%s3237_s17 + $0x60] sm:$0xff]  ;;  %s4523_s29 = scalar_lea.vmem %s4281_s19, %s2749_s28 [#allocation2]   ;;  %s4526_s30 = scalar_lea.vmem %s4450_s23, %s2749_s28  }
 0x248   : >> { %2110 = vst [vmem:[%s3233_s12 + $0x50] sm:$0xff] %v2109_v21  ;;  %2112 = vst [vmem:[%s3233_s12 + $0x58] sm:$0xff] %v2111_v23  ;;  %v2115_v17 = vld [vmem:[%s3237_s17 + $0x68] sm:$0xff]  ;;  %v2117_v8 = vld [vmem:[%s3237_s17 + $0x70] sm:$0xff] }
 0x249   : >> { %2114 = vst [vmem:[%s3233_s12 + $0x60] sm:$0xff] %v2113_v59  ;;  %2116 = vst [vmem:[%s3233_s12 + $0x68] sm:$0xff] %v2115_v17  ;;  %v2119_v13 = vld [vmem:[%s3237_s17 + $0x78] sm:$0xff]  ;;  %v2121_v12 = vld [vmem:[%s3237_s17 + $0x80] sm:$0xff] }
 0x24a   : >> { %2118 = vst [vmem:[%s3233_s12 + $0x70] sm:$0xff] %v2117_v8  ;;  %v2123_v55 = vld [vmem:[%s3237_s17 + $0x88] sm:$0xff]  ;;  %2120 = vst [vmem:[%s3233_s12 + $0x78] sm:$0xff] %v2119_v13  ;;  %v2125_v25 = vld [vmem:[%s3237_s17 + $0x90] sm:$0xff] }
 0x24b   : >> { %2122 = vst [vmem:[%s3233_s12 + $0x80] sm:$0xff] %v2121_v12  ;;  %2124 = vst [vmem:[%s3233_s12 + $0x88] sm:$0xff] %v2123_v55  ;;  %v2127_v58 = vld [vmem:[%s3237_s17 + $0x98] sm:$0xff]  ;;  %v2129_v52 = vld [vmem:[%s3237_s17 + $0xa0] sm:$0xff] }
 0x24c   : >> { %2126 = vst [vmem:[%s3233_s12 + $0x90] sm:$0xff] %v2125_v25  ;;  %2128 = vst [vmem:[%s3233_s12 + $0x98] sm:$0xff] %v2127_v58  ;;  %v2131_v61 = vld [vmem:[%s3237_s17 + $0xa8] sm:$0xff]  ;;  %v2133_v6 = vld [vmem:[%s3237_s17 + $0xb0] sm:$0xff] }
 0x24d   : >> { %2130 = vst [vmem:[%s3233_s12 + $0xa0] sm:$0xff] %v2129_v52  ;;  %v2135_v28 = vld [vmem:[%s3237_s17 + $0xb8] sm:$0xff]  ;;  %2132 = vst [vmem:[%s3233_s12 + $0xa8] sm:$0xff] %v2131_v61  ;;  %v2137_v18 = vld [vmem:[%s3237_s17 + $0xc0] sm:$0xff] }
 0x24e   : >> { %2134 = vst [vmem:[%s3233_s12 + $0xb0] sm:$0xff] %v2133_v6  ;;  %2136 = vst [vmem:[%s3233_s12 + $0xb8] sm:$0xff] %v2135_v28  ;;  %v2139_v22 = vld [vmem:[%s3237_s17 + $0xc8] sm:$0xff]  ;;  %v2141_v24 = vld [vmem:[%s3237_s17 + $0xd0] sm:$0xff] }
 0x24f   : >> { %2138 = vst [vmem:[%s3233_s12 + $0xc0] sm:$0xff] %v2137_v18  ;;  %2140 = vst [vmem:[%s3233_s12 + $0xc8] sm:$0xff] %v2139_v22  ;;  %v2143_v31 = vld [vmem:[%s3237_s17 + $0xd8] sm:$0xff]  ;;  %v2145_v32 = vld [vmem:[%s3237_s17 + $0xe0] sm:$0xff] }
 0x250   : >> { %2142 = vst [vmem:[%s3233_s12 + $0xd0] sm:$0xff] %v2141_v24  ;;  %v2147_v35 = vld [vmem:[%s3237_s17 + $0xe8] sm:$0xff]  ;;  %2144 = vst [vmem:[%s3233_s12 + $0xd8] sm:$0xff] %v2143_v31  ;;  %v2149_v34 = vld [vmem:[%s3237_s17 + $0xf0] sm:$0xff] }
 0x251   : >> { %2146 = vst [vmem:[%s3233_s12 + $0xe0] sm:$0xff] %v2145_v32  ;;  %2148 = vst [vmem:[%s3233_s12 + $0xe8] sm:$0xff] %v2147_v35  ;;  %v2151_v7 = vld [vmem:[%s3237_s17 + $0xf8] sm:$0xff]  ;;  %v2153_v26 = vld [vmem:[%s3237_s17 + $0x100] sm:$0xff] }
 0x252   : >> { %2150 = vst [vmem:[%s3233_s12 + $0xf0] sm:$0xff] %v2149_v34  ;;  %2152 = vst [vmem:[%s3233_s12 + $0xf8] sm:$0xff] %v2151_v7  ;;  %v2155_v30 = vld [vmem:[%s3237_s17 + $0x108] sm:$0xff]  ;;  %v2157_v36 = vld [vmem:[%s3237_s17 + $0x110] sm:$0xff] }
 0x253   : >> { %2154 = vst [vmem:[%s3233_s12 + $0x100] sm:$0xff] %v2153_v26  ;;  %v2159_v39 = vld [vmem:[%s3237_s17 + $0x118] sm:$0xff]  ;;  %2156 = vst [vmem:[%s3233_s12 + $0x108] sm:$0xff] %v2155_v30  ;;  %v2161_v40 = vld [vmem:[%s3237_s17 + $0x120] sm:$0xff] }
 0x254   : >> { %2158 = vst [vmem:[%s3233_s12 + $0x110] sm:$0xff] %v2157_v36  ;;  %2160 = vst [vmem:[%s3233_s12 + $0x118] sm:$0xff] %v2159_v39  ;;  %v2163_v42 = vld [vmem:[%s3237_s17 + $0x128] sm:$0xff]  ;;  %v2165_v43 = vld [vmem:[%s3237_s17 + $0x130] sm:$0xff] }
 0x255   : >> { %2162 = vst [vmem:[%s3233_s12 + $0x120] sm:$0xff] %v2161_v40  ;;  %2164 = vst [vmem:[%s3233_s12 + $0x128] sm:$0xff] %v2163_v42  ;;  %v2167_v29 = vld [vmem:[%s3237_s17 + $0x138] sm:$0xff]  ;;  %v2169_v38 = vld [vmem:[%s3237_s17 + $0x140] sm:$0xff] }
 0x256   : >> { %2166 = vst [vmem:[%s3233_s12 + $0x130] sm:$0xff] %v2165_v43  ;;  %v2171_v27 = vld [vmem:[%s3237_s17 + $0x148] sm:$0xff]  ;;  %2168 = vst [vmem:[%s3233_s12 + $0x138] sm:$0xff] %v2167_v29  ;;  %v2173_v44 = vld [vmem:[%s3237_s17 + $0x150] sm:$0xff] }
 0x257   : >> { %2170 = vst [vmem:[%s3233_s12 + $0x140] sm:$0xff] %v2169_v38  ;;  %2172 = vst [vmem:[%s3233_s12 + $0x148] sm:$0xff] %v2171_v27  ;;  %v2175_v47 = vld [vmem:[%s3237_s17 + $0x158] sm:$0xff]  ;;  %v2177_v50 = vld [vmem:[%s3237_s17 + $0x160] sm:$0xff] }
 0x258   : >> { %2174 = vst [vmem:[%s3233_s12 + $0x150] sm:$0xff] %v2173_v44  ;;  %2176 = vst [vmem:[%s3233_s12 + $0x158] sm:$0xff] %v2175_v47  ;;  %v2179_v48 = vld [vmem:[%s3237_s17 + $0x168] sm:$0xff]  ;;  %v2181_v51 = vld [vmem:[%s3237_s17 + $0x170] sm:$0xff] }
 0x259   : >> { %2178 = vst [vmem:[%s3233_s12 + $0x160] sm:$0xff] %v2177_v50  ;;  %v2183_v46 = vld [vmem:[%s3237_s17 + $0x178] sm:$0xff]  ;;  %2180 = vst [vmem:[%s3233_s12 + $0x168] sm:$0xff] %v2179_v48  ;;  %v2185_v33 = vld [vmem:[%s3237_s17 + $0x180] sm:$0xff] }
 0x25a   : >> { %2182 = vst [vmem:[%s3233_s12 + $0x170] sm:$0xff] %v2181_v51  ;;  %2184 = vst [vmem:[%s3233_s12 + $0x178] sm:$0xff] %v2183_v46  ;;  %v2187_v37 = vld [vmem:[%s3237_s17 + $0x188] sm:$0xff]  ;;  %v2189_v53 = vld [vmem:[%s3237_s17 + $0x190] sm:$0xff] }
 0x25b   : >> { %2186 = vst [vmem:[%s3233_s12 + $0x180] sm:$0xff] %v2185_v33  ;;  %2188 = vst [vmem:[%s3233_s12 + $0x188] sm:$0xff] %v2187_v37  ;;  %v2191_v63 = vld [vmem:[%s3237_s17 + $0x198] sm:$0xff]  ;;  %v2193_v57 = vld [vmem:[%s3237_s17 + $0x1a0] sm:$0xff] }
 0x25c   : >> { %2190 = vst [vmem:[%s3233_s12 + $0x190] sm:$0xff] %v2189_v53  ;;  %v2195_v60 = vld [vmem:[%s3237_s17 + $0x1a8] sm:$0xff]  ;;  %2192 = vst [vmem:[%s3233_s12 + $0x198] sm:$0xff] %v2191_v63  ;;  %v2197_v56 = vld [vmem:[%s3237_s17 + $0x1b0] sm:$0xff]  ;;  %2085 = sbr.rel (!%p2082_p12) target bundleno = 578 (0x242), region = 118 }
 0x25d   : >> { %2194 = vst [vmem:[%s3233_s12 + $0x1a0] sm:$0xff] %v2193_v57  ;;  %2196 = vst [vmem:[%s3233_s12 + $0x1a8] sm:$0xff] %v2195_v60  ;;  %v2199_v0 = vld [vmem:[%s3237_s17 + $0x1b8] sm:$0xff]  ;;  %v2201_v45 = vld [vmem:[%s3237_s17 + $0x1c0] sm:$0xff] }
 0x25e   : >> { %2198 = vst [vmem:[%s3233_s12 + $0x1b0] sm:$0xff] %v2197_v56  ;;  %2200 = vst [vmem:[%s3233_s12 + $0x1b8] sm:$0xff] %v2199_v0  ;;  %v2203_v41 = vld [vmem:[%s3237_s17 + $0x1c8] sm:$0xff]  ;;  %v2205_v1 = vld [vmem:[%s3237_s17 + $0x1d0] sm:$0xff] }
 0x25f   : >> { %2202 = vst [vmem:[%s3233_s12 + $0x1c0] sm:$0xff] %v2201_v45  ;;  %v2207_v9 = vld [vmem:[%s3237_s17 + $0x1d8] sm:$0xff]  ;;  %2204 = vst [vmem:[%s3233_s12 + $0x1c8] sm:$0xff] %v2203_v41  ;;  %v2209_v4 = vld [vmem:[%s3237_s17 + $0x1e0] sm:$0xff] }
 0x260   : >> { %2206 = vst [vmem:[%s3233_s12 + $0x1d0] sm:$0xff] %v2205_v1  ;;  %2208 = vst [vmem:[%s3233_s12 + $0x1d8] sm:$0xff] %v2207_v9  ;;  %v2211_v3 = vld [vmem:[%s3237_s17 + $0x1e8] sm:$0xff]  ;;  %v2213_v5 = vld [vmem:[%s3237_s17 + $0x1f0] sm:$0xff] }
 0x261   : >> { %2210 = vst [vmem:[%s3233_s12 + $0x1e0] sm:$0xff] %v2209_v4  ;;  %2212 = vst [vmem:[%s3233_s12 + $0x1e8] sm:$0xff] %v2211_v3  ;;  %v2215_v49 = vld [vmem:[%s3237_s17 + $0x1f8] sm:$0xff]  ;;  %s4656_s17 = smov %s4523_s29 }
 0x262   : >> { %2214 = vst [vmem:[%s3233_s12 + $0x1f0] sm:$0xff] %v2213_v5  ;;  %2216 = vst [vmem:[%s3233_s12 + $0x1f8] sm:$0xff] %v2215_v49  ;;  %s4655_s12 = smov %s4526_s30 }
 0x263 PF: > { %s4631_s3 = sand.u32 63, %s4662_s9   ;;  %s2760_s4 = sshll.u32 %s4456_s25, 9 }
 0x264   : > { %s2228_s5 = scalar_lea.vmem %s4281_s19, %s2760_s4 [#allocation2]   ;;  %s2230_s6 = scalar_lea.vmem %s4450_s23, %s2760_s4  }
 0x265   : > { %p2754_p13 = scmp.le.s32.totalorder %s4631_s3, 0 }
 0x266   : > { %s3247_s7 = smov (!%p2754_p13), %s2230_s6   ;;  %s3251_s8 = smov (!%p2754_p13), %s2228_s5  }
 0x267   : > { %2321 = sbr.rel (%p2754_p13) target bundleno = 632 (0x278), region = 123  ;;  %s3255_s11 = smov (!%p2754_p13), 0  }
 0x268   : > { %s3259_s14 = smov (!%p2754_p13), 0  }
 0x26e LB: >> { %v2240_v14 = vld [vmem:[%s3253_s8] sm:$0xff]  ;;  %s2242_s15 = sadd.s32 1, %s3257_s11  ;;  %s2234_s14 = sadd.s32 1, %s3261_s14   ;;  %s3261_s14 = sphi %s3259_s14, %s2234_s14   ;;  %s3257_s11 = sphi %s3255_s11, %s3256_s11   ;;  %s3253_s8 = sphi %s3251_s8, %s2247_s8   ;;  %s3249_s7 = sphi %s3247_s7, %s2248_s7  }
 0x26f   : >> { %2241 = vst [vmem:[%s3249_s7] sm:$0xff] %v2240_v14  ;;  %p2243_p0 = scmp.ge.s32.totalorder %s2242_s15, %s4631_s3  ;;  %p2233_p1 = scmp.ge.s32.totalorder %s2234_s14, %s4631_s3 }
 0x271   : >> { %s4666_s15 = smov (%p2243_p0, %s2242_s15), 0  ;;  %2236 = sbr.rel (!%p2233_p1) target bundleno = 622 (0x26e), region = 129 }
 0x272   : >> { %s2755_s19 = sshll.u32 %s4666_s15, 3  ;;  %s3256_s11 = smov %s4666_s15  }
 0x273   : >> { %s2247_s8 = scalar_lea.vmem %s2228_s5, %s2755_s19 [#allocation2]   ;;  %s2248_s7 = scalar_lea.vmem %s2230_s6, %s2755_s19  }
 0x278 PF: > { %p9_p2 = scmp.ge.s32.totalorder %s3296_s13, 4   ;;  %s4658_s9 = smov %s3225_s10 }
 0x279   : > { %s4659_s10 = smov %s3304_s16  ;;  %s4660_s11 = smov %s3296_s13 }
 0x27a   :  { %11 = sbr.rel (!%p9_p2) target bundleno = 2 (0x2), region = 140 }

</bundles_post_ra>
